<compile_context>
chip_gen: v7x
topology: tpu7x:2x2x1
jax: 0.10.0
libtpu: 0.0.40
codegen_flags: <defaults>
</compile_context>

<pallas_src>
from functools import partial

import numpy as np
import jax
import jax.numpy as jnp
from jax import lax
from jax.experimental import pallas as pl
from jax.experimental.pallas import tpu as pltpu

SCALE = float(np.sqrt(0.5))  # torch.sqrt(torch.FloatTensor([0.5]))


# ---------------------------------------------------------------------------
# Kernel
# ---------------------------------------------------------------------------
def conv_encoder_kernel(emb_ref, w_e2h_ref, b_e2h_ref, w_conv_ref, b_conv_ref,
                        w_h2e_ref, b_h2e_ref, conved_ref, combined_ref, x_ref,
                        *, seq_len):
    # emb_ref:      (R, E)  fp32 embedded tokens+positions, R = Bt * S (flattened)
    # w_e2h_ref:    (E, H)  bf16        b_e2h_ref: (1, H)  fp32
    # w_conv_ref:   (1, K, H, 2H) bf16  b_conv_ref: (1, 1, 2H) fp32  (this layer only)
    # w_h2e_ref:    (H, E)  bf16        b_h2e_ref: (1, E)  fp32
    # conved_ref / combined_ref: (R, E) fp32 outputs
    # x_ref:        (R, H)  fp32 persistent hidden state across the layer sweep
    l = pl.program_id(1)
    n_layers = pl.num_programs(1)

    R, _E = emb_ref.shape
    _, K, H, _H2 = w_conv_ref.shape
    pad = (K - 1) // 2

    # ---- first layer step: emb2hid projection into the persistent scratch ----
    @pl.when(l == 0)
    def _():
        x0 = jnp.dot(emb_ref[...].astype(jnp.bfloat16), w_e2h_ref[...],
                     preferred_element_type=jnp.float32) + b_e2h_ref[...]
        x_ref[...] = x0

    # ---- conv block for layer `l` --------------------------------------------
    x = x_ref[...]                                            # (R, H) fp32
    # Sequence position of each flattened row, kept (R, 1) so the integer mod and
    # compares are 1-lane-wide VALU work; the `where` broadcasts over H.
    # NOTE: relies on rows being flattened as (batch, seq) with uniform length S.
    pos = lax.broadcasted_iota(jnp.int32, (R, 1), 0) % seq_len

    # K accumulating bf16 matmuls (one per conv tap) into a single fp32 accumulator.
    acc = None
    for k in range(K):
        shift = pad - k                                       # tap k reads x[s + k - pad]
        if shift == 0:
            tap = x.astype(jnp.bfloat16)
        else:
            xs = pltpu.roll(x, shift=shift % R, axis=0)       # XLU sublane roll
            if shift > 0:
                mask = pos >= shift                           # zero rows pulled across edges
            else:
                mask = pos < seq_len + shift
            tap = jnp.where(mask, xs, 0.0).astype(jnp.bfloat16)
        d = jnp.dot(tap, w_conv_ref[0, k], preferred_element_type=jnp.float32)
        acc = d if acc is None else acc + d
    y = acc + b_conv_ref[0]                                   # (R, 2H) fp32

    # GLU over channels (first H = value, last H = gate), residual + scale (fp32).
    x_new = (y[:, :H] * jax.nn.sigmoid(y[:, H:]) + x) * SCALE
    x_ref[...] = x_new

    # ---- last layer step: hid2emb + combine with the embeddings --------------
    @pl.when(l == n_layers - 1)
    def _():
        conved = jnp.dot(x_new.astype(jnp.bfloat16), w_h2e_ref[...],
                         preferred_element_type=jnp.float32) + b_h2e_ref[...]
        conved_ref[...] = conved
        combined_ref[...] = (conved + emb_ref[...]) * SCALE


# ---------------------------------------------------------------------------
# Generation-aware tiling / VMEM heuristics
# ---------------------------------------------------------------------------
def _tpu_generation():
    try:
        kind = jax.devices()[0].device_kind.lower()
    except Exception:
        return None
    for tag, gen in (("v7", 7), ("7x", 7), ("v6", 6), ("v5", 5), ("v4", 4)):
        if tag in kind:
            return gen
    return None


def _working_set_bytes(bt, S, E, H, H2, K):
    r = bt * S
    return (2 * r * E * 4                                   # emb block (double-buffered)
            + 2 * 2 * r * E * 4                             # conved + combined out blocks
            + 2 * K * H * H2 * 2                            # per-layer conv W (bf16, 2 bufs)
            + 2 * (E * H + H * E) * 2                       # projection weights (bf16)
            + 2 * (H + E + H2) * 4                          # biases
            + r * H * 4                                     # persistent x scratch
            + 4 * r * max(H, H2) * 4)                       # fp32/bf16 intermediates


def _pick_batch_tile(B, S, E, H, H2, K, gen):
    num_cores = 2 if gen == 7 else 1                        # v7x has 2 TensorCores
    phys_vmem = (64 if gen == 7 else 128) * 1024 * 1024
    budget = int(0.55 * phys_vmem)
    row_mult = 128 if gen == 5 else 256                     # MXU row granularity
    row_cap = 2048 if gen == 7 else 4096

    cands = [bt for bt in range(1, B + 1)
             if B % bt == 0
             and ((bt * S) % 8 == 0 or bt == B)             # sublane-aligned block rows
             and _working_set_bytes(bt, S, E, H, H2, K) <= budget]
    if not cands:
        cands = [1]
    # Keep >= num_cores steps on the parallel axis so megacore sharding has work.
    core_ok = [bt for bt in cands if (B // bt) >= num_cores]
    if core_ok:
        cands = core_ok
    capped = [bt for bt in cands if bt * S <= row_cap]
    if capped:
        cands = capped
    aligned = [bt for bt in cands if (bt * S) % row_mult == 0]
    return max(aligned) if aligned else max(cands)


# ---------------------------------------------------------------------------
# Wrapper
# ---------------------------------------------------------------------------
def conv_encoder_forward(src, params, *, batch_tile=None):
    """src: (src_len, batch) int32 token ids (same convention as the PyTorch module)."""
    src_bt = src.T                                          # (B, S) == src.T in torch
    B, S = src_bt.shape

    # Embedding lookups (gather) stay in plain JAX glue.
    tok = params["tok_embedding"][src_bt]                   # (B, S, E)
    pos = params["pos_embedding"][jnp.arange(S)][None]      # (1, S, E)
    emb = (tok + pos).astype(jnp.float32)                   # dropout == identity (eval)

    E = emb.shape[-1]
    L, K, H, H2 = params["w_conv"].shape
    assert K % 2 == 1, "Kernel size must be odd!"

    # bf16 matmul operands (fp32 accumulation inside the kernel); biases stay fp32.
    w_e2h = params["w_e2h"].astype(jnp.bfloat16)            # (E, H)
    w_conv = params["w_conv"].astype(jnp.bfloat16)          # (L, K, H, 2H)
    w_h2e = params["w_h2e"].astype(jnp.bfloat16)            # (H, E)
    b_e2h = params["b_e2h"].reshape(1, H).astype(jnp.float32)
    b_conv = params["b_conv"].reshape(L, 1, H2).astype(jnp.float32)
    b_h2e = params["b_h2e"].reshape(1, E).astype(jnp.float32)

    gen = _tpu_generation()
    if batch_tile is None:
        batch_tile = _pick_batch_tile(B, S, E, H, H2, K, gen)
    Bt = batch_tile
    assert B % Bt == 0, "batch_tile must divide the batch size"
    R = Bt * S

    # Lane-dense 2-D layout: rows = batch*seq, cols = emb (wrapper reshape is free plumbing).
    emb2d = emb.reshape(B * S, E)

    phys_vmem = (64 if gen == 7 else 128) * 1024 * 1024
    ws = _working_set_bytes(Bt, S, E, H, H2, K)
    vmem_limit = int(min(int(0.75 * phys_vmem), max(2 * ws, 16 * 1024 * 1024)))

    kernel = partial(conv_encoder_kernel, seq_len=S)
    out_shapes = (jax.ShapeDtypeStruct((B * S, E), jnp.float32),
                  jax.ShapeDtypeStruct((B * S, E), jnp.float32))

    def run(single_buffer_weights):
        # Grid-invariant weight/bias blocks are never re-DMA'd; a single buffer saves VMEM.
        const = {"pipeline_mode": pl.Buffered(1)} if single_buffer_weights else {}
        grid_spec = pltpu.PrefetchScalarGridSpec(
            num_scalar_prefetch=0,
            grid=(B // Bt, L),
            in_specs=[
                pl.BlockSpec((R, E), lambda b, l: (b, 0)),               # embedded (flat)
                pl.BlockSpec((E, H), lambda b, l: (0, 0), **const),      # emb2hid W
                pl.BlockSpec((1, H), lambda b, l: (0, 0), **const),      # emb2hid b
                pl.BlockSpec((1, K, H, H2), lambda b, l: (l, 0, 0, 0)),  # conv W (per layer)
                pl.BlockSpec((1, 1, H2), lambda b, l: (l, 0, 0)),        # conv b (per layer)
                pl.BlockSpec((H, E), lambda b, l: (0, 0), **const),      # hid2emb W
                pl.BlockSpec((1, E), lambda b, l: (0, 0), **const),      # hid2emb b
            ],
            out_specs=[
                pl.BlockSpec((R, E), lambda b, l: (b, 0)),
                pl.BlockSpec((R, E), lambda b, l: (b, 0)),
            ],
            scratch_shapes=[pltpu.VMEM((R, H), jnp.float32)],
        )
        out = pl.pallas_call(
            kernel,
            out_shape=out_shapes,
            grid_spec=grid_spec,
            compiler_params=pltpu.CompilerParams(
                dimension_semantics=("parallel", "arbitrary"),
                vmem_limit_bytes=vmem_limit),
        )(emb2d, w_e2h, b_e2h, w_conv, b_conv, w_h2e, b_h2e)
        return jax.block_until_ready(out)

    try:
        conved2d, combined2d = run(True)
    except Exception:
        # pl.Buffered(1) on invariant specs is a VMEM-only optimization; fall back to
        # default double-buffering if the installed Pallas rejects it.
        conved2d, combined2d = run(False)

    return conved2d.reshape(B, S, E), combined2d.reshape(B, S, E)


# ---------------------------------------------------------------------------
# Pure-JAX fp32 reference matching the PyTorch forward (eval mode)
# ---------------------------------------------------------------------------
def reference_forward(src, params):
    src_bt = src.T
    B, S = src_bt.shape
    emb = params["tok_embedding"][src_bt] + params["pos_embedding"][jnp.arange(S)][None]
    x = emb @ params["w_e2h"] + params["b_e2h"]
    L, K, H, H2 = params["w_conv"].shape
    pad = (K - 1) // 2
    for l in range(L):
        xp = jnp.pad(x, ((0, 0), (pad, pad), (0, 0)))
        y = params["b_conv"][l][None, None, :]
        for k in range(K):
            y = y + xp[:, k:k + S, :] @ params["w_conv"][l, k]
        a, g = y[..., :H], y[..., H:]
        x = (a * jax.nn.sigmoid(g) + x) * SCALE
    conved = x @ params["w_h2e"] + params["b_h2e"]
    combined = (conved + emb) * SCALE
    return conved, combined


def init_params(key, vocab_size, emb_dim, hid_dim, n_layers, kernel_size, max_length):
    ks = jax.random.split(key, 8)
    std = 0.1
    tok_embedding = std * jax.random.normal(ks[0], (vocab_size, emb_dim), jnp.float32)
    pos_embedding = std * jax.random.normal(ks[1], (max_length, emb_dim), jnp.float32)
    w_e2h = std * jax.random.normal(ks[2], (emb_dim, hid_dim), jnp.float32)
    b_e2h = std * jax.random.normal(ks[3], (hid_dim,), jnp.float32)
    # PyTorch Conv1d weight is (out=2H, in=H, K); transpose to (K, H, 2H) per layer.
    w_conv_pt = std * jax.random.normal(ks[4], (n_layers, 2 * hid_dim, hid_dim, kernel_size),
                                        jnp.float32)
    w_conv = jnp.transpose(w_conv_pt, (0, 3, 2, 1))          # (L, K, H, 2H)
    b_conv = std * jax.random.normal(ks[5], (n_layers, 2 * hid_dim), jnp.float32)
    w_h2e = std * jax.random.normal(ks[6], (hid_dim, emb_dim), jnp.float32)
    b_h2e = std * jax.random.normal(ks[7], (emb_dim,), jnp.float32)
    return dict(tok_embedding=tok_embedding, pos_embedding=pos_embedding,
                w_e2h=w_e2h, b_e2h=b_e2h, w_conv=w_conv, b_conv=b_conv,
                w_h2e=w_h2e, b_h2e=b_h2e)


if __name__ == "__main__":
    vocab_size, emb_dim, hid_dim = 50, 32, 32
    n_layers, kernel_size, max_length = 2, 3, 100
    batch, src_len = 2, 8

    key = jax.random.PRNGKey(0)
    k_param, k_src = jax.random.split(key)
    params = init_params(k_param, vocab_size, emb_dim, hid_dim,
                         n_layers, kernel_size, max_length)
    # src has shape (src_len, batch), same as the PyTorch module's expected input
    src = jax.random.randint(k_src, (src_len, batch), 0, vocab_size, dtype=jnp.int32)

    conved, combined = conv_encoder_forward(src, params)
    jax.block_until_ready((conved, combined))

    conved_ref, combined_ref = reference_forward(src, params)
    # bf16 matmul operands vs fp32 reference -> loosened tolerance
    np.testing.assert_allclose(np.asarray(conved), np.asarray(conved_ref),
                               rtol=2e-2, atol=2e-2)
    np.testing.assert_allclose(np.asarray(combined), np.asarray(combined_ref),
                               rtol=2e-2, atol=2e-2)
    print("KERNEL_OK")
</pallas_src>

<mosaic_0001>
module attributes {stable_mosaic.version = 11 : i64} {
  func.func @conv_encoder_kernel(%arg0: i32, %arg1: i32, %arg2: memref<16x32xf32, #tpu.memory_space<vmem>>, %arg3: memref<32x32xbf16, #tpu.memory_space<vmem>>, %arg4: memref<1x32xf32, #tpu.memory_space<vmem>>, %arg5: memref<1x3x32x64xbf16, #tpu.memory_space<vmem>>, %arg6: memref<1x1x64xf32, #tpu.memory_space<vmem>>, %arg7: memref<32x32xbf16, #tpu.memory_space<vmem>>, %arg8: memref<1x32xf32, #tpu.memory_space<vmem>>, %arg9: memref<16x32xf32, #tpu.memory_space<vmem>>, %arg10: memref<16x32xf32, #tpu.memory_space<vmem>>, %arg11: memref<16x32xf32, #tpu.memory_space<vmem>>) attributes {dimension_semantics = [#tpu.dimension_semantics<parallel>, #tpu.dimension_semantics<arbitrary>], iteration_bounds = array<i64: 1, 2>, scalar_prefetch = 0 : i64, scratch_operands = 1 : i64, tpu.core_type = #tpu.core_type<tc>, window_params = [{transform_indices = @transform_0, window_bounds = array<i64: 16, 32>}, {pipeline_mode = #tpu.pipeline_mode<synchronous>, transform_indices = @transform_1, window_bounds = array<i64: 32, 32>}, {pipeline_mode = #tpu.pipeline_mode<synchronous>, transform_indices = @transform_2, window_bounds = array<i64: 1, 32>}, {transform_indices = @transform_3, window_bounds = array<i64: 1, 3, 32, 64>}, {transform_indices = @transform_4, window_bounds = array<i64: 1, 1, 64>}, {pipeline_mode = #tpu.pipeline_mode<synchronous>, transform_indices = @transform_5, window_bounds = array<i64: 32, 32>}, {pipeline_mode = #tpu.pipeline_mode<synchronous>, transform_indices = @transform_6, window_bounds = array<i64: 1, 32>}, {transform_indices = @transform_7, window_bounds = array<i64: 16, 32>}, {transform_indices = @transform_8, window_bounds = array<i64: 16, 32>}]} {
    %c0_i32 = arith.constant 0 : i32
    %0 = arith.cmpi eq, %arg1, %c0_i32 : i32
    %1 = arith.extui %0 : i1 to i32
    %c0_i32_0 = arith.constant 0 : i32
    %2 = arith.cmpi ne, %1, %c0_i32_0 : i32
    scf.if %2 {
      %c0_31 = arith.constant 0 : index
      %c0_32 = arith.constant 0 : index
      %68 = vector.load %arg2[%c0_31, %c0_32] : memref<16x32xf32, #tpu.memory_space<vmem>>, vector<16x32xf32>
      %69 = arith.truncf %68 : vector<16x32xf32> to vector<16x32xbf16>
      %c0_33 = arith.constant 0 : index
      %c0_34 = arith.constant 0 : index
      %70 = vector.load %arg3[%c0_33, %c0_34] : memref<32x32xbf16, #tpu.memory_space<vmem>>, vector<32x32xbf16>
      %cst_35 = arith.constant dense<0.000000e+00> : vector<16x32xf32>
      %71 = tpu.matmul %69, %70, %cst_35 {dimension_numbers = #tpu.dot_dimension_numbers<[1], [0], [0], [1], [0, 0, 1, 1], [], []>} : vector<16x32xbf16>, vector<32x32xbf16>, vector<16x32xf32> -> vector<16x32xf32>
      %c0_36 = arith.constant 0 : index
      %c0_37 = arith.constant 0 : index
      %72 = vector.load %arg4[%c0_36, %c0_37] : memref<1x32xf32, #tpu.memory_space<vmem>>, vector<1x32xf32>
      %73 = vector.broadcast %72 : vector<1x32xf32> to vector<16x32xf32>
      %74 = arith.addf %71, %73 : vector<16x32xf32>
      %c0_38 = arith.constant 0 : index
      %c0_39 = arith.constant 0 : index
      %75 = vector.load %arg11[%c0_38, %c0_39] : memref<16x32xf32, #tpu.memory_space<vmem>>, vector<16x32xf32>
      tpu.vector_store %arg11[%c0_38, %c0_39], %74 {strides = array<i32>} : memref<16x32xf32, #tpu.memory_space<vmem>>, vector<16x32xf32>,
    } else {
    }
    %c0 = arith.constant 0 : index
    %c0_1 = arith.constant 0 : index
    %3 = vector.load %arg11[%c0, %c0_1] : memref<16x32xf32, #tpu.memory_space<vmem>>, vector<16x32xf32>
    %4 = tpu.iota {dimensions = array<i32: 0>} : vector<16x1xi32>
    %c8_i32 = arith.constant 8 : i32
    %c0_i32_2 = arith.constant 0 : i32
    %5 = arith.cmpi eq, %c8_i32, %c0_i32_2 : i32
    %c1_i32 = arith.constant 1 : i32
    %6 = arith.select %5, %c1_i32, %c8_i32 : i32
    %7 = vector.broadcast %6 : i32 to vector<16x1xi32>
    %8 = arith.remsi %4, %7 : vector<16x1xi32>
    %c0_i32_3 = arith.constant 0 : i32
    %9 = vector.broadcast %c0_i32_3 : i32 to vector<16x1xi32>
    %10 = arith.cmpi ne, %8, %9 : vector<16x1xi32>
    %c0_i32_4 = arith.constant 0 : i32
    %11 = vector.broadcast %c0_i32_4 : i32 to vector<16x1xi32>
    %12 = arith.cmpi slt, %8, %11 : vector<16x1xi32>
    %c0_i32_5 = arith.constant 0 : i32
    %13 = arith.cmpi slt, %6, %c0_i32_5 : i32
    %14 = vector.broadcast %13 : i1 to vector<16x1xi1>
    %15 = vector.broadcast %14 : vector<16x1xi1> to vector<16x1xi1>
    %16 = arith.xori %12, %15 : vector<16x1xi1>
    %17 = arith.andi %16, %10 : vector<16x1xi1>
    %18 = vector.broadcast %6 : i32 to vector<16x1xi32>
    %19 = arith.addi %8, %18 : vector<16x1xi32>
    %20 = arith.select %17, %19, %8 : vector<16x1xi1>, vector<16x1xi32>
    %c1_i32_6 = arith.constant 1 : i32
    %21 = tpu.dynamic_rotate %3 by %c1_i32_6 dim 0 : vector<16x32xf32>, i32 -> vector<16x32xf32>
    %c1_i32_7 = arith.constant 1 : i32
    %22 = vector.broadcast %c1_i32_7 : i32 to vector<16x1xi32>
    %23 = arith.cmpi sge, %20, %22 : vector<16x1xi32>
    %cst = arith.constant 0.000000e+00 : f32
    %24 = vector.shape_cast %23 : vector<16x1xi1> to vector<16x1xi1>
    %25 = vector.broadcast %24 : vector<16x1xi1> to vector<16x32xi1>
    %26 = vector.broadcast %cst : f32 to vector<16x32xf32>
    %27 = arith.select %25, %21, %26 : vector<16x32xi1>, vector<16x32xf32>
    %28 = arith.truncf %27 : vector<16x32xf32> to vector<16x32xbf16>
    %c0_8 = arith.constant 0 : index
    %c0_9 = arith.constant 0 : index
    %c0_10 = arith.constant 0 : index
    %c0_11 = arith.constant 0 : index
    %29 = vector.load %arg5[%c0_8, %c0_9, %c0_10, %c0_11] : memref<1x3x32x64xbf16, #tpu.memory_space<vmem>>, vector<1x1x32x64xbf16>
    %30 = vector.shape_cast %29 : vector<1x1x32x64xbf16> to vector<32x64xbf16>
    %cst_12 = arith.constant dense<0.000000e+00> : vector<16x64xf32>
    %31 = tpu.matmul %28, %30, %cst_12 {dimension_numbers = #tpu.dot_dimension_numbers<[1], [0], [0], [1], [0, 0, 1, 1], [], []>} : vector<16x32xbf16>, vector<32x64xbf16>, vector<16x64xf32> -> vector<16x64xf32>
    %32 = arith.truncf %3 : vector<16x32xf32> to vector<16x32xbf16>
    %c0_13 = arith.constant 0 : index
    %c1 = arith.constant 1 : index
    %c0_14 = arith.constant 0 : index
    %c0_15 = arith.constant 0 : index
    %33 = vector.load %arg5[%c0_13, %c1, %c0_14, %c0_15] : memref<1x3x32x64xbf16, #tpu.memory_space<vmem>>, vector<1x1x32x64xbf16>
    %34 = vector.shape_cast %33 : vector<1x1x32x64xbf16> to vector<32x64xbf16>
    %cst_16 = arith.constant dense<0.000000e+00> : vector<16x64xf32>
    %35 = tpu.matmul %32, %34, %cst_16 {dimension_numbers = #tpu.dot_dimension_numbers<[1], [0], [0], [1], [0, 0, 1, 1], [], []>} : vector<16x32xbf16>, vector<32x64xbf16>, vector<16x64xf32> -> vector<16x64xf32>
    %36 = arith.addf %31, %35 : vector<16x64xf32>
    %c15_i32 = arith.constant 15 : i32
    %37 = tpu.dynamic_rotate %3 by %c15_i32 dim 0 : vector<16x32xf32>, i32 -> vector<16x32xf32>
    %c7_i32 = arith.constant 7 : i32
    %38 = vector.broadcast %c7_i32 : i32 to vector<16x1xi32>
    %39 = arith.cmpi slt, %20, %38 : vector<16x1xi32>
    %cst_17 = arith.constant 0.000000e+00 : f32
    %40 = vector.shape_cast %39 : vector<16x1xi1> to vector<16x1xi1>
    %41 = vector.broadcast %40 : vector<16x1xi1> to vector<16x32xi1>
    %42 = vector.broadcast %cst_17 : f32 to vector<16x32xf32>
    %43 = arith.select %41, %37, %42 : vector<16x32xi1>, vector<16x32xf32>
    %44 = arith.truncf %43 : vector<16x32xf32> to vector<16x32xbf16>
    %c0_18 = arith.constant 0 : index
    %c2 = arith.constant 2 : index
    %c0_19 = arith.constant 0 : index
    %c0_20 = arith.constant 0 : index
    %45 = vector.load %arg5[%c0_18, %c2, %c0_19, %c0_20] : memref<1x3x32x64xbf16, #tpu.memory_space<vmem>>, vector<1x1x32x64xbf16>
    %46 = vector.shape_cast %45 : vector<1x1x32x64xbf16> to vector<32x64xbf16>
    %cst_21 = arith.constant dense<0.000000e+00> : vector<16x64xf32>
    %47 = tpu.matmul %44, %46, %cst_21 {dimension_numbers = #tpu.dot_dimension_numbers<[1], [0], [0], [1], [0, 0, 1, 1], [], []>} : vector<16x32xbf16>, vector<32x64xbf16>, vector<16x64xf32> -> vector<16x64xf32>
    %48 = arith.addf %36, %47 : vector<16x64xf32>
    %c0_22 = arith.constant 0 : index
    %c0_23 = arith.constant 0 : index
    %c0_24 = arith.constant 0 : index
    %49 = vector.load %arg6[%c0_22, %c0_23, %c0_24] : memref<1x1x64xf32, #tpu.memory_space<vmem>>, vector<1x1x64xf32>
    %50 = vector.shape_cast %49 : vector<1x1x64xf32> to vector<1x64xf32>
    %51 = vector.broadcast %50 : vector<1x64xf32> to vector<16x64xf32>
    %52 = arith.addf %48, %51 : vector<16x64xf32>
    %53 = vector.extract_strided_slice %52 {offsets = [0, 0], sizes = [16, 32], strides = [1, 1]} : vector<16x64xf32> to vector<16x32xf32>
    %54 = vector.extract_strided_slice %52 {offsets = [0, 32], sizes = [16, 32], strides = [1, 1]} : vector<16x64xf32> to vector<16x32xf32>
    %55 = arith.negf %54 : vector<16x32xf32>
    %56 = math.exp %55 : vector<16x32xf32>
    %cst_25 = arith.constant 1.000000e+00 : f32
    %57 = vector.broadcast %cst_25 : f32 to vector<16x32xf32>
    %58 = arith.addf %57, %56 : vector<16x32xf32>
    %59 = arith.divf %57, %58 : vector<16x32xf32>
    %60 = arith.mulf %53, %59 : vector<16x32xf32>
    %61 = arith.addf %60, %3 : vector<16x32xf32>
    %cst_26 = arith.constant 0.707106769 : f32
    %62 = vector.broadcast %cst_26 : f32 to vector<16x32xf32>
    %63 = arith.mulf %61, %62 : vector<16x32xf32>
    %c0_27 = arith.constant 0 : index
    %c0_28 = arith.constant 0 : index
    %64 = vector.load %arg11[%c0_27, %c0_28] : memref<16x32xf32, #tpu.memory_space<vmem>>, vector<16x32xf32>
    tpu.vector_store %arg11[%c0_27, %c0_28], %63 {strides = array<i32>} : memref<16x32xf32, #tpu.memory_space<vmem>>, vector<16x32xf32>,
    %c1_i32_29 = arith.constant 1 : i32
    %65 = arith.cmpi eq, %arg1, %c1_i32_29 : i32
    %66 = arith.extui %65 : i1 to i32
    %c0_i32_30 = arith.constant 0 : i32
    %67 = arith.cmpi ne, %66, %c0_i32_30 : i32
    scf.if %67 {
      %68 = arith.truncf %63 : vector<16x32xf32> to vector<16x32xbf16>
      %c0_31 = arith.constant 0 : index
      %c0_32 = arith.constant 0 : index
      %69 = vector.load %arg7[%c0_31, %c0_32] : memref<32x32xbf16, #tpu.memory_space<vmem>>, vector<32x32xbf16>
      %cst_33 = arith.constant dense<0.000000e+00> : vector<16x32xf32>
      %70 = tpu.matmul %68, %69, %cst_33 {dimension_numbers = #tpu.dot_dimension_numbers<[1], [0], [0], [1], [0, 0, 1, 1], [], []>} : vector<16x32xbf16>, vector<32x32xbf16>, vector<16x32xf32> -> vector<16x32xf32>
      %c0_34 = arith.constant 0 : index
      %c0_35 = arith.constant 0 : index
      %71 = vector.load %arg8[%c0_34, %c0_35] : memref<1x32xf32, #tpu.memory_space<vmem>>, vector<1x32xf32>
      %72 = vector.broadcast %71 : vector<1x32xf32> to vector<16x32xf32>
      %73 = arith.addf %70, %72 : vector<16x32xf32>
      %c0_36 = arith.constant 0 : index
      %c0_37 = arith.constant 0 : index
      %74 = vector.load %arg9[%c0_36, %c0_37] : memref<16x32xf32, #tpu.memory_space<vmem>>, vector<16x32xf32>
      tpu.vector_store %arg9[%c0_36, %c0_37], %73 {strides = array<i32>} : memref<16x32xf32, #tpu.memory_space<vmem>>, vector<16x32xf32>,
      %c0_38 = arith.constant 0 : index
      %c0_39 = arith.constant 0 : index
      %75 = vector.load %arg2[%c0_38, %c0_39] : memref<16x32xf32, #tpu.memory_space<vmem>>, vector<16x32xf32>
      %76 = arith.addf %73, %75 : vector<16x32xf32>
      %cst_40 = arith.constant 0.707106769 : f32
      %77 = vector.broadcast %cst_40 : f32 to vector<16x32xf32>
      %78 = arith.mulf %76, %77 : vector<16x32xf32>
      %c0_41 = arith.constant 0 : index
      %c0_42 = arith.constant 0 : index
      %79 = vector.load %arg10[%c0_41, %c0_42] : memref<16x32xf32, #tpu.memory_space<vmem>>, vector<16x32xf32>
      tpu.vector_store %arg10[%c0_41, %c0_42], %78 {strides = array<i32>} : memref<16x32xf32, #tpu.memory_space<vmem>>, vector<16x32xf32>,
    } else {
    }
    return
  }
  func.func @transform_0(%arg0: i32, %arg1: i32) -> (i32, i32) {
    %c0_i32 = arith.constant 0 : i32
    %c0_i32_0 = arith.constant 0 : i32
    return %arg0, %c0_i32 : i32, i32
  }
  func.func @transform_1(%arg0: i32, %arg1: i32) -> (i32, i32) {
    %c0_i32 = arith.constant 0 : i32
    %c0_i32_0 = arith.constant 0 : i32
    %c0_i32_1 = arith.constant 0 : i32
    return %c0_i32, %c0_i32_0 : i32, i32
  }
  func.func @transform_2(%arg0: i32, %arg1: i32) -> (i32, i32) {
    %c0_i32 = arith.constant 0 : i32
    %c0_i32_0 = arith.constant 0 : i32
    %c0_i32_1 = arith.constant 0 : i32
    return %c0_i32, %c0_i32_0 : i32, i32
  }
  func.func @transform_3(%arg0: i32, %arg1: i32) -> (i32, i32, i32, i32) {
    %c0_i32 = arith.constant 0 : i32
    %c0_i32_0 = arith.constant 0 : i32
    %c0_i32_1 = arith.constant 0 : i32
    %c0_i32_2 = arith.constant 0 : i32
    return %arg1, %c0_i32, %c0_i32_0, %c0_i32_1 : i32, i32, i32, i32
  }
  func.func @transform_4(%arg0: i32, %arg1: i32) -> (i32, i32, i32) {
    %c0_i32 = arith.constant 0 : i32
    %c0_i32_0 = arith.constant 0 : i32
    %c0_i32_1 = arith.constant 0 : i32
    return %arg1, %c0_i32, %c0_i32_0 : i32, i32, i32
  }
  func.func @transform_5(%arg0: i32, %arg1: i32) -> (i32, i32) {
    %c0_i32 = arith.constant 0 : i32
    %c0_i32_0 = arith.constant 0 : i32
    %c0_i32_1 = arith.constant 0 : i32
    return %c0_i32, %c0_i32_0 : i32, i32
  }
  func.func @transform_6(%arg0: i32, %arg1: i32) -> (i32, i32) {
    %c0_i32 = arith.constant 0 : i32
    %c0_i32_0 = arith.constant 0 : i32
    %c0_i32_1 = arith.constant 0 : i32
    return %c0_i32, %c0_i32_0 : i32, i32
  }
  func.func @transform_7(%arg0: i32, %arg1: i32) -> (i32, i32) {
    %c0_i32 = arith.constant 0 : i32
    %c0_i32_0 = arith.constant 0 : i32
    return %arg0, %c0_i32 : i32, i32
  }
  func.func @transform_8(%arg0: i32, %arg1: i32) -> (i32, i32) {
    %c0_i32 = arith.constant 0 : i32
    %c0_i32_0 = arith.constant 0 : i32
    return %arg0, %c0_i32 : i32, i32
  }
}

module attributes {stable_mosaic.version = 11 : i64} {
  func.func @conv_encoder_kernel(%arg0: i32, %arg1: i32, %arg2: memref<16x32xf32, #tpu.memory_space<vmem>>, %arg3: memref<32x32xbf16, #tpu.memory_space<vmem>>, %arg4: memref<1x32xf32, #tpu.memory_space<vmem>>, %arg5: memref<1x3x32x64xbf16, #tpu.memory_space<vmem>>, %arg6: memref<1x1x64xf32, #tpu.memory_space<vmem>>, %arg7: memref<32x32xbf16, #tpu.memory_space<vmem>>, %arg8: memref<1x32xf32, #tpu.memory_space<vmem>>, %arg9: memref<16x32xf32, #tpu.memory_space<vmem>>, %arg10: memref<16x32xf32, #tpu.memory_space<vmem>>, %arg11: memref<16x32xf32, #tpu.memory_space<vmem>>) attributes {dimension_semantics = [#tpu.dimension_semantics<parallel>, #tpu.dimension_semantics<arbitrary>], iteration_bounds = array<i64: 1, 2>, scalar_prefetch = 0 : i64, scratch_operands = 1 : i64, tpu.core_type = #tpu.core_type<tc>, window_params = [{transform_indices = @transform_0, window_bounds = array<i64: 16, 32>}, {pipeline_mode = #tpu.pipeline_mode<synchronous>, transform_indices = @transform_1, window_bounds = array<i64: 32, 32>}, {pipeline_mode = #tpu.pipeline_mode<synchronous>, transform_indices = @transform_2, window_bounds = array<i64: 1, 32>}, {transform_indices = @transform_3, window_bounds = array<i64: 1, 3, 32, 64>}, {transform_indices = @transform_4, window_bounds = array<i64: 1, 1, 64>}, {pipeline_mode = #tpu.pipeline_mode<synchronous>, transform_indices = @transform_5, window_bounds = array<i64: 32, 32>}, {pipeline_mode = #tpu.pipeline_mode<synchronous>, transform_indices = @transform_6, window_bounds = array<i64: 1, 32>}, {transform_indices = @transform_7, window_bounds = array<i64: 16, 32>}, {transform_indices = @transform_8, window_bounds = array<i64: 16, 32>}]} {
    %c0_i32 = arith.constant 0 : i32
    %0 = arith.cmpi eq, %arg1, %c0_i32 : i32
    %1 = arith.extui %0 : i1 to i32
    %c0_i32_0 = arith.constant 0 : i32
    %2 = arith.cmpi ne, %1, %c0_i32_0 : i32
    scf.if %2 {
      %c0_31 = arith.constant 0 : index
      %c0_32 = arith.constant 0 : index
      %68 = vector.load %arg2[%c0_31, %c0_32] : memref<16x32xf32, #tpu.memory_space<vmem>>, vector<16x32xf32>
      %69 = arith.truncf %68 : vector<16x32xf32> to vector<16x32xbf16>
      %c0_33 = arith.constant 0 : index
      %c0_34 = arith.constant 0 : index
      %70 = vector.load %arg3[%c0_33, %c0_34] : memref<32x32xbf16, #tpu.memory_space<vmem>>, vector<32x32xbf16>
      %cst_35 = arith.constant dense<0.000000e+00> : vector<16x32xf32>
      %71 = tpu.matmul %69, %70, %cst_35 {dimension_numbers = #tpu.dot_dimension_numbers<[1], [0], [0], [1], [0, 0, 1, 1], [], []>} : vector<16x32xbf16>, vector<32x32xbf16>, vector<16x32xf32> -> vector<16x32xf32>
      %c0_36 = arith.constant 0 : index
      %c0_37 = arith.constant 0 : index
      %72 = vector.load %arg4[%c0_36, %c0_37] : memref<1x32xf32, #tpu.memory_space<vmem>>, vector<1x32xf32>
      %73 = vector.broadcast %72 : vector<1x32xf32> to vector<16x32xf32>
      %74 = arith.addf %71, %73 : vector<16x32xf32>
      %c0_38 = arith.constant 0 : index
      %c0_39 = arith.constant 0 : index
      %75 = vector.load %arg11[%c0_38, %c0_39] : memref<16x32xf32, #tpu.memory_space<vmem>>, vector<16x32xf32>
      tpu.vector_store %arg11[%c0_38, %c0_39], %74 {strides = array<i32>} : memref<16x32xf32, #tpu.memory_space<vmem>>, vector<16x32xf32>,
    } else {
    }
    %c0 = arith.constant 0 : index
    %c0_1 = arith.constant 0 : index
    %3 = vector.load %arg11[%c0, %c0_1] : memref<16x32xf32, #tpu.memory_space<vmem>>, vector<16x32xf32>
    %4 = tpu.iota {dimensions = array<i32: 0>} : vector<16x1xi32>
    %c8_i32 = arith.constant 8 : i32
    %c0_i32_2 = arith.constant 0 : i32
    %5 = arith.cmpi eq, %c8_i32, %c0_i32_2 : i32
    %c1_i32 = arith.constant 1 : i32
    %6 = arith.select %5, %c1_i32, %c8_i32 : i32
    %7 = vector.broadcast %6 : i32 to vector<16x1xi32>
    %8 = arith.remsi %4, %7 : vector<16x1xi32>
    %c0_i32_3 = arith.constant 0 : i32
    %9 = vector.broadcast %c0_i32_3 : i32 to vector<16x1xi32>
    %10 = arith.cmpi ne, %8, %9 : vector<16x1xi32>
    %c0_i32_4 = arith.constant 0 : i32
    %11 = vector.broadcast %c0_i32_4 : i32 to vector<16x1xi32>
    %12 = arith.cmpi slt, %8, %11 : vector<16x1xi32>
    %c0_i32_5 = arith.constant 0 : i32
    %13 = arith.cmpi slt, %6, %c0_i32_5 : i32
    %14 = vector.broadcast %13 : i1 to vector<16x1xi1>
    %15 = vector.broadcast %14 : vector<16x1xi1> to vector<16x1xi1>
    %16 = arith.xori %12, %15 : vector<16x1xi1>
    %17 = arith.andi %16, %10 : vector<16x1xi1>
    %18 = vector.broadcast %6 : i32 to vector<16x1xi32>
    %19 = arith.addi %8, %18 : vector<16x1xi32>
    %20 = arith.select %17, %19, %8 : vector<16x1xi1>, vector<16x1xi32>
    %c1_i32_6 = arith.constant 1 : i32
    %21 = tpu.dynamic_rotate %3 by %c1_i32_6 dim 0 : vector<16x32xf32>, i32 -> vector<16x32xf32>
    %c1_i32_7 = arith.constant 1 : i32
    %22 = vector.broadcast %c1_i32_7 : i32 to vector<16x1xi32>
    %23 = arith.cmpi sge, %20, %22 : vector<16x1xi32>
    %cst = arith.constant 0.000000e+00 : f32
    %24 = vector.shape_cast %23 : vector<16x1xi1> to vector<16x1xi1>
    %25 = vector.broadcast %24 : vector<16x1xi1> to vector<16x32xi1>
    %26 = vector.broadcast %cst : f32 to vector<16x32xf32>
    %27 = arith.select %25, %21, %26 : vector<16x32xi1>, vector<16x32xf32>
    %28 = arith.truncf %27 : vector<16x32xf32> to vector<16x32xbf16>
    %c0_8 = arith.constant 0 : index
    %c0_9 = arith.constant 0 : index
    %c0_10 = arith.constant 0 : index
    %c0_11 = arith.constant 0 : index
    %29 = vector.load %arg5[%c0_8, %c0_9, %c0_10, %c0_11] : memref<1x3x32x64xbf16, #tpu.memory_space<vmem>>, vector<1x1x32x64xbf16>
    %30 = vector.shape_cast %29 : vector<1x1x32x64xbf16> to vector<32x64xbf16>
    %cst_12 = arith.constant dense<0.000000e+00> : vector<16x64xf32>
    %31 = tpu.matmul %28, %30, %cst_12 {dimension_numbers = #tpu.dot_dimension_numbers<[1], [0], [0], [1], [0, 0, 1, 1], [], []>} : vector<16x32xbf16>, vector<32x64xbf16>, vector<16x64xf32> -> vector<16x64xf32>
    %32 = arith.truncf %3 : vector<16x32xf32> to vector<16x32xbf16>
    %c0_13 = arith.constant 0 : index
    %c1 = arith.constant 1 : index
    %c0_14 = arith.constant 0 : index
    %c0_15 = arith.constant 0 : index
    %33 = vector.load %arg5[%c0_13, %c1, %c0_14, %c0_15] : memref<1x3x32x64xbf16, #tpu.memory_space<vmem>>, vector<1x1x32x64xbf16>
    %34 = vector.shape_cast %33 : vector<1x1x32x64xbf16> to vector<32x64xbf16>
    %cst_16 = arith.constant dense<0.000000e+00> : vector<16x64xf32>
    %35 = tpu.matmul %32, %34, %cst_16 {dimension_numbers = #tpu.dot_dimension_numbers<[1], [0], [0], [1], [0, 0, 1, 1], [], []>} : vector<16x32xbf16>, vector<32x64xbf16>, vector<16x64xf32> -> vector<16x64xf32>
    %36 = arith.addf %31, %35 : vector<16x64xf32>
    %c15_i32 = arith.constant 15 : i32
    %37 = tpu.dynamic_rotate %3 by %c15_i32 dim 0 : vector<16x32xf32>, i32 -> vector<16x32xf32>
    %c7_i32 = arith.constant 7 : i32
    %38 = vector.broadcast %c7_i32 : i32 to vector<16x1xi32>
    %39 = arith.cmpi slt, %20, %38 : vector<16x1xi32>
    %cst_17 = arith.constant 0.000000e+00 : f32
    %40 = vector.shape_cast %39 : vector<16x1xi1> to vector<16x1xi1>
    %41 = vector.broadcast %40 : vector<16x1xi1> to vector<16x32xi1>
    %42 = vector.broadcast %cst_17 : f32 to vector<16x32xf32>
    %43 = arith.select %41, %37, %42 : vector<16x32xi1>, vector<16x32xf32>
    %44 = arith.truncf %43 : vector<16x32xf32> to vector<16x32xbf16>
    %c0_18 = arith.constant 0 : index
    %c2 = arith.constant 2 : index
    %c0_19 = arith.constant 0 : index
    %c0_20 = arith.constant 0 : index
    %45 = vector.load %arg5[%c0_18, %c2, %c0_19, %c0_20] : memref<1x3x32x64xbf16, #tpu.memory_space<vmem>>, vector<1x1x32x64xbf16>
    %46 = vector.shape_cast %45 : vector<1x1x32x64xbf16> to vector<32x64xbf16>
    %cst_21 = arith.constant dense<0.000000e+00> : vector<16x64xf32>
    %47 = tpu.matmul %44, %46, %cst_21 {dimension_numbers = #tpu.dot_dimension_numbers<[1], [0], [0], [1], [0, 0, 1, 1], [], []>} : vector<16x32xbf16>, vector<32x64xbf16>, vector<16x64xf32> -> vector<16x64xf32>
    %48 = arith.addf %36, %47 : vector<16x64xf32>
    %c0_22 = arith.constant 0 : index
    %c0_23 = arith.constant 0 : index
    %c0_24 = arith.constant 0 : index
    %49 = vector.load %arg6[%c0_22, %c0_23, %c0_24] : memref<1x1x64xf32, #tpu.memory_space<vmem>>, vector<1x1x64xf32>
    %50 = vector.shape_cast %49 : vector<1x1x64xf32> to vector<1x64xf32>
    %51 = vector.broadcast %50 : vector<1x64xf32> to vector<16x64xf32>
    %52 = arith.addf %48, %51 : vector<16x64xf32>
    %53 = vector.extract_strided_slice %52 {offsets = [0, 0], sizes = [16, 32], strides = [1, 1]} : vector<16x64xf32> to vector<16x32xf32>
    %54 = vector.extract_strided_slice %52 {offsets = [0, 32], sizes = [16, 32], strides = [1, 1]} : vector<16x64xf32> to vector<16x32xf32>
    %55 = arith.negf %54 : vector<16x32xf32>
    %56 = math.exp %55 : vector<16x32xf32>
    %cst_25 = arith.constant 1.000000e+00 : f32
    %57 = vector.broadcast %cst_25 : f32 to vector<16x32xf32>
    %58 = arith.addf %57, %56 : vector<16x32xf32>
    %59 = arith.divf %57, %58 : vector<16x32xf32>
    %60 = arith.mulf %53, %59 : vector<16x32xf32>
    %61 = arith.addf %60, %3 : vector<16x32xf32>
    %cst_26 = arith.constant 0.707106769 : f32
    %62 = vector.broadcast %cst_26 : f32 to vector<16x32xf32>
    %63 = arith.mulf %61, %62 : vector<16x32xf32>
    %c0_27 = arith.constant 0 : index
    %c0_28 = arith.constant 0 : index
    %64 = vector.load %arg11[%c0_27, %c0_28] : memref<16x32xf32, #tpu.memory_space<vmem>>, vector<16x32xf32>
    tpu.vector_store %arg11[%c0_27, %c0_28], %63 {strides = array<i32>} : memref<16x32xf32, #tpu.memory_space<vmem>>, vector<16x32xf32>,
    %c1_i32_29 = arith.constant 1 : i32
    %65 = arith.cmpi eq, %arg1, %c1_i32_29 : i32
    %66 = arith.extui %65 : i1 to i32
    %c0_i32_30 = arith.constant 0 : i32
    %67 = arith.cmpi ne, %66, %c0_i32_30 : i32
    scf.if %67 {
      %68 = arith.truncf %63 : vector<16x32xf32> to vector<16x32xbf16>
      %c0_31 = arith.constant 0 : index
      %c0_32 = arith.constant 0 : index
      %69 = vector.load %arg7[%c0_31, %c0_32] : memref<32x32xbf16, #tpu.memory_space<vmem>>, vector<32x32xbf16>
      %cst_33 = arith.constant dense<0.000000e+00> : vector<16x32xf32>
      %70 = tpu.matmul %68, %69, %cst_33 {dimension_numbers = #tpu.dot_dimension_numbers<[1], [0], [0], [1], [0, 0, 1, 1], [], []>} : vector<16x32xbf16>, vector<32x32xbf16>, vector<16x32xf32> -> vector<16x32xf32>
      %c0_34 = arith.constant 0 : index
      %c0_35 = arith.constant 0 : index
      %71 = vector.load %arg8[%c0_34, %c0_35] : memref<1x32xf32, #tpu.memory_space<vmem>>, vector<1x32xf32>
      %72 = vector.broadcast %71 : vector<1x32xf32> to vector<16x32xf32>
      %73 = arith.addf %70, %72 : vector<16x32xf32>
      %c0_36 = arith.constant 0 : index
      %c0_37 = arith.constant 0 : index
      %74 = vector.load %arg9[%c0_36, %c0_37] : memref<16x32xf32, #tpu.memory_space<vmem>>, vector<16x32xf32>
      tpu.vector_store %arg9[%c0_36, %c0_37], %73 {strides = array<i32>} : memref<16x32xf32, #tpu.memory_space<vmem>>, vector<16x32xf32>,
      %c0_38 = arith.constant 0 : index
      %c0_39 = arith.constant 0 : index
      %75 = vector.load %arg2[%c0_38, %c0_39] : memref<16x32xf32, #tpu.memory_space<vmem>>, vector<16x32xf32>
      %76 = arith.addf %73, %75 : vector<16x32xf32>
      %cst_40 = arith.constant 0.707106769 : f32
      %77 = vector.broadcast %cst_40 : f32 to vector<16x32xf32>
      %78 = arith.mulf %76, %77 : vector<16x32xf32>
      %c0_41 = arith.constant 0 : index
      %c0_42 = arith.constant 0 : index
      %79 = vector.load %arg10[%c0_41, %c0_42] : memref<16x32xf32, #tpu.memory_space<vmem>>, vector<16x32xf32>
      tpu.vector_store %arg10[%c0_41, %c0_42], %78 {strides = array<i32>} : memref<16x32xf32, #tpu.memory_space<vmem>>, vector<16x32xf32>,
    } else {
    }
    return
  }
  func.func @transform_0(%arg0: i32, %arg1: i32) -> (i32, i32) {
    %c0_i32 = arith.constant 0 : i32
    %c0_i32_0 = arith.constant 0 : i32
    return %arg0, %c0_i32 : i32, i32
  }
  func.func @transform_1(%arg0: i32, %arg1: i32) -> (i32, i32) {
    %c0_i32 = arith.constant 0 : i32
    %c0_i32_0 = arith.constant 0 : i32
    %c0_i32_1 = arith.constant 0 : i32
    return %c0_i32, %c0_i32_0 : i32, i32
  }
  func.func @transform_2(%arg0: i32, %arg1: i32) -> (i32, i32) {
    %c0_i32 = arith.constant 0 : i32
    %c0_i32_0 = arith.constant 0 : i32
    %c0_i32_1 = arith.constant 0 : i32
    return %c0_i32, %c0_i32_0 : i32, i32
  }
  func.func @transform_3(%arg0: i32, %arg1: i32) -> (i32, i32, i32, i32) {
    %c0_i32 = arith.constant 0 : i32
    %c0_i32_0 = arith.constant 0 : i32
    %c0_i32_1 = arith.constant 0 : i32
    %c0_i32_2 = arith.constant 0 : i32
    return %arg1, %c0_i32, %c0_i32_0, %c0_i32_1 : i32, i32, i32, i32
  }
  func.func @transform_4(%arg0: i32, %arg1: i32) -> (i32, i32, i32) {
    %c0_i32 = arith.constant 0 : i32
    %c0_i32_0 = arith.constant 0 : i32
    %c0_i32_1 = arith.constant 0 : i32
    return %arg1, %c0_i32, %c0_i32_0 : i32, i32, i32
  }
  func.func @transform_5(%arg0: i32, %arg1: i32) -> (i32, i32) {
    %c0_i32 = arith.constant 0 : i32
    %c0_i32_0 = arith.constant 0 : i32
    %c0_i32_1 = arith.constant 0 : i32
    return %c0_i32, %c0_i32_0 : i32, i32
  }
  func.func @transform_6(%arg0: i32, %arg1: i32) -> (i32, i32) {
    %c0_i32 = arith.constant 0 : i32
    %c0_i32_0 = arith.constant 0 : i32
    %c0_i32_1 = arith.constant 0 : i32
    return %c0_i32, %c0_i32_0 : i32, i32
  }
  func.func @transform_7(%arg0: i32, %arg1: i32) -> (i32, i32) {
    %c0_i32 = arith.constant 0 : i32
    %c0_i32_0 = arith.constant 0 : i32
    return %arg0, %c0_i32 : i32, i32
  }
  func.func @transform_8(%arg0: i32, %arg1: i32) -> (i32, i32) {
    %c0_i32 = arith.constant 0 : i32
    %c0_i32_0 = arith.constant 0 : i32
    return %arg0, %c0_i32 : i32, i32
  }
}

</mosaic_0001>

<bundles_post_ra>
// kernel: tpu_custom_call.1
= control target key start
LH: loop header
LB: loop body
LE: loop exit
PB: predicated region body
PF: predicated region fallthrough
CT: control target
= control target key end

     0   :  { %s1846_s0 = inlined_call_operand.hbm [shape: f32[16,32], index: 0, kind: input, shape index: {}]   ;;  %s1847_s1 = inlined_call_operand.hbm [shape: bf16[32,32], index: 1, kind: input, shape index: {}]   ;;  %s1848_s2 = inlined_call_operand.hbm [shape: f32[1,32], index: 2, kind: input, shape index: {}]   ;;  %s1849_s3 = inlined_call_operand.hbm [shape: bf16[2,3,32,64], index: 3, kind: input, shape index: {}]   ;;  %s1850_s4 = inlined_call_operand.vmem [shape: f32[2,1,64], index: 4, kind: input, shape index: {}]   ;;  %s1851_s5 = inlined_call_operand.vmem [shape: bf16[32,32], index: 5, kind: input, shape index: {}]   ;;  %s1852_s6 = inlined_call_operand.vmem [shape: f32[1,32], index: 6, kind: input, shape index: {}]   ;;  %s1853_s7 = inlined_call_operand.hbm [shape: f32[16,32], index: 7, kind: output, shape index: {0}]   ;;  %s1854_s8 = inlined_call_operand.hbm [shape: f32[16,32], index: 8, kind: output, shape index: {1}]  }
   0x1   :  { %1863 = sst [smem:[#allocation19_spill]] %s1847_s1 }
   0x2   :  { %1864 = sst [smem:[#allocation20_spill]] %s1854_s8 }
   0x3   :  { %14 = vsyncpa [#allocation4], 0 }
   0x4   :  { %15 = vsyncpa [#allocation7], 0 }
   0x5   :  { %16 = vsyncpa [#allocation10], 0 }
   0x6   :  { %18 = vsyncpa [#allocation10 + $0x1], 0 }
   0x7   :  { %19 = vsyncpa [#allocation5], 0 }
   0x8   :  { %20 = vsyncpa [#allocation13], 0  ;;  %s1518_s27 = smov 0   ;;  %s1520_s28 = smov 0  }
   0x9   :  { %s1522_s29 = smov 0   ;;  %s1524_s30 = smov 0  }
   0xa   :  { %s1526_s9 = smov 0   ;;  %s1528_s10 = smov 0  }
   0xb LB: > { %s1859_s11 = sadd.s32 4294967295, %s1452_s10   ;;  %p126_p0 = scmp.ne.s32.totalorder %s1436_s28, %s1432_s27  ;;  %s1452_s10 = sphi %s1528_s10, %s26_s10   ;;  %s1448_s9 = sphi %s1526_s9, %s1888_s9   ;;  %s1444_s30 = sphi %s1524_s30, %s1887_s30   ;;  %s1440_s29 = sphi %s1522_s29, %s1886_s29   ;;  %s1436_s28 = sphi %s1520_s28, %s1885_s28   ;;  %s1432_s27 = sphi %s1518_s27, %s1884_s27  }
   0xc   : > { %p1550_p1 = scmp.eq.s32.totalorder %s1859_s11, 0  ;;  %p985_p2 = scmp.ge.s32.totalorder %s1452_s10, 1 }
   0xd   : > { %p257_p3 = scmp.lt.s32.totalorder %s1452_s10, 3  ;;  %s1454_s15 = smov [#allocation6]  }
   0xe   : > { %s1865_s12 = scalar_select %p1550_p1, 1, 0 }
   0xf   : > { %p1558_p4 = por %p1550_p1, %p126_p0  ;;  %p1562_p5 = pnand %p985_p2, %p257_p3 }
  0x10   : > { %s285_s16 = sshll.u32 %s1454_s15, 4  ;;  %s1455_s18 = smov [#allocation3]   ;;  %s286_s16 = int_to_ptr.vmem [resolvable:$true] %s285_s16 }
  0x11   : > { %s1866_s13 = scalar_select %p1558_p4, 1, 0 }
  0x12   : > { %s1867_s14 = scalar_select %p1562_p5, 1, 0 }
  0x13   : > { %p1111_p6 = pneg %p1562_p5  ;;  %s272_s19 = sshll.u32 %s1455_s18, 4  ;;  %s273_s19 = int_to_ptr.vmem [resolvable:$true] %s272_s19 }
  0x14   : > { %s1869_s1 = sld [smem:[#allocation19_spill]] }
  0x15   : > { %p1570_p7 = pnand %p1111_p6, %p1550_p1 }
  0x17   : > { %p1582_p9 = pneg %p1570_p7 }
  0x1a   : > { %s1220_s22 = scalar_lea.hbm %s1869_s1, 256 }
  0x1b   : > { %p1221_p8 = scmp.ne.s32.totalorder %s1869_s1, %s1220_s22  ;;  %p1227_p12 = scmp.lt.u32.totalorder %s1220_s22, %s1869_s1 }
  0x1d   : > { %p1223_p10 = pnand %p1582_p9, %p1221_p8 }
  0x1f   : > { %p1224_p11 = pneg %p1223_p10 }
  0x21   : > { %p1229_p13 = pnand %p1227_p12, %p1224_p11 }
  0x23   : > { %1232 = shalt.err (!%p1229_p13)
}
  0x24   : > { %s1233_s15 = scalar_lea.vmem %s286_s16, 256  ;;  %p1241_p6 = scmp.lt.s32.totalorder %s286_s16, %s286_s16 }
  0x25   : > { %p1234_p0 = scmp.ne.s32.totalorder %s286_s16, %s1233_s15  ;;  %p1242_p4 = scmp.lt.s32.totalorder %s1233_s15, %s1233_s15 }
  0x27   : > { %p1236_p2 = pnand %p1234_p0, %p1582_p9  ;;  %p1243_p1 = por %p1242_p4, %p1241_p6 }
  0x29   : > { %p1237_p3 = pneg %p1236_p2 }
  0x2b   : > { %p1244_p5 = pnand %p1243_p1, %p1237_p3 }
  0x2d   : > { %1247 = shalt.err (!%p1244_p5)
}
  0x2e   : > { %s1861_s18 = smov 64   ;;  %s1862_s20 = smov 4  }
  0x2f   : > { %1117 = dma.hbm_to_vmem [thread:$0]  (!%p1570_p7), %s1869_s1, 256, %s286_s16, [#allocation7], %s1861_s18, %s1861_s18, %s1862_s20  }
  0x30   : > { %s1248_s26 = scalar_lea.hbm %s1846_s0, 256 }
  0x31   : > { %p1249_p1 = scmp.ne.s32.totalorder %s1846_s0, %s1248_s26  ;;  %p1255_p8 = scmp.lt.u32.totalorder %s1248_s26, %s1846_s0 }
  0x33   : > { %p1251_p4 = pnand %p1249_p1, %p1582_p9 }
  0x35   : > { %p1252_p5 = pneg %p1251_p4 }
  0x37   : > { %p1257_p10 = pnand %p1255_p8, %p1252_p5 }
  0x39   : > { %1260 = shalt.err (!%p1257_p10)
}
  0x3a   : > { %s1261_s21 = scalar_lea.vmem %s273_s19, 256  ;;  %p1269_p0 = scmp.lt.s32.totalorder %s273_s19, %s273_s19 }
  0x3b   : > { %p1262_p11 = scmp.ne.s32.totalorder %s273_s19, %s1261_s21  ;;  %p1270_p2 = scmp.lt.s32.totalorder %s1261_s21, %s1261_s21 }
  0x3d   : > { %p1264_p12 = pnand %p1262_p11, %p1582_p9  ;;  %p1271_p3 = por %p1270_p2, %p1269_p0 }
  0x3f   : > { %p1265_p13 = pneg %p1264_p12 }
  0x41   : > { %p1272_p6 = pnand %p1271_p3, %p1265_p13 }
  0x43   : > { %1275 = shalt.err (!%p1272_p6)
}
  0x44   : > { %s1458_s16 = smov 128   ;;  %s1459_s22 = smov 8  }
  0x45   : > { %1114 = dma.hbm_to_vmem [thread:$0]  (!%p1570_p7), %s1846_s0, 256, %s273_s19, [#allocation4], %s1458_s16, %s1458_s16, %s1459_s22  }
  0x46   : > { %s1460_s23 = smov [#allocation8]   ;;  %s1276_s15 = scalar_lea.hbm %s1848_s2, 16 }
  0x47   : > { %s299_s24 = sshll.u32 %s1460_s23, 4  ;;  %p1277_p1 = scmp.ne.s32.totalorder %s1848_s2, %s1276_s15  ;;  %s300_s24 = int_to_ptr.vmem [resolvable:$true] %s299_s24 }
  0x48   : > { %p1283_p8 = scmp.lt.u32.totalorder %s1276_s15, %s1848_s2 }
  0x49   : > { %p1279_p4 = pnand %p1277_p1, %p1582_p9 }
  0x4b   : > { %p1280_p5 = pneg %p1279_p4 }
  0x4d   : > { %p1285_p10 = pnand %p1283_p8, %p1280_p5 }
  0x4f   : > { %1288 = shalt.err (!%p1285_p10)
}
  0x50   : > { %s1289_s19 = scalar_lea.vmem %s300_s24, 16  ;;  %s1296_s16 = scalar_lea.vmem %s300_s24, 32 }
  0x51   : > { %p1290_p11 = scmp.ne.s32.totalorder %s300_s24, %s1289_s19  ;;  %p1297_p0 = scmp.lt.s32.totalorder %s300_s24, %s300_s24 }
  0x52   : > { %p1298_p2 = scmp.lt.s32.totalorder %s1296_s16, %s1289_s19 }
  0x53   : > { %p1292_p12 = pnand %p1290_p11, %p1582_p9 }
  0x54   : > { %p1299_p3 = por %p1298_p2, %p1297_p0 }
  0x55   : > { %p1293_p13 = pneg %p1292_p12 }
  0x57   : > { %p1300_p6 = pnand %p1299_p3, %p1293_p13 }
  0x59   : > { %1303 = shalt.err (!%p1300_p6)
}
  0x5a   : > { %1120 = dma.hbm_to_vmem [thread:$0]  (!%p1570_p7), %s1848_s2, 16, %s300_s24, [#allocation7]  }
  0x5b   : > { %s35_s1 = sadd.s32 1, %s1448_s9  ;;  %s113_s25 = sadd.s32 1, %s1440_s29 }
  0x5c   : > { %p36_p9 = scmp.ge.s32.totalorder %s35_s1, 2  ;;  %p120_p1 = scmp.ne.s32.totalorder %s1440_s29, %s1436_s28 }
  0x5d   : > { %p121_p4 = scmp.eq.s32.totalorder %s1452_s10, 0  ;;  %p1128_p8 = scmp.lt.s32.totalorder %s1452_s10, 2 }
  0x5e   : > { %s1890_s1 = smov (%p36_p9, %s35_s1), 0  ;;  %s316_s20 = sand.u32 1, %s1440_s29  }
  0x5f   : > { %p122_p5 = por %p121_p4, %p120_p1  ;;  %s110_s17 = ssub.s32 %s1448_s9, %s1890_s1 }
  0x60   : > { %p111_p10 = scmp.eq.s32.totalorder %s110_s17, 0  ;;  %s1086_s8 = smul.u32 48, %s316_s20 }
  0x61   : > { %p1648_p11 = pnand %p1128_p8, %p122_p5  ;;  %s1087_s24 = smul.u32 768, %s1448_s9 }
  0x62   : > { %s1653_s23 = scalar_select %p111_p10, %s1440_s29, %s113_s25  }
  0x63   : > { %s320_s26 = scalar_lea.vmem [#allocation9], %s1086_s8  ;;  %s1659_s19 = scalar_lea.hbm %s1849_s3, %s1087_s24 }
  0x64   : > { %s327_s27 = sshll.u32 %s320_s26, 4  ;;  %s1663_s16 = scalar_lea.sflag [#allocation10], %s316_s20  ;;  %s1661_s27 = int_to_ptr.vmem [resolvable:$true] %s327_s27 }
  0x65   : > { %s1304_s18 = scalar_lea.hbm %s1659_s19, 768  ;;  %p1306_p12 = pneg %p1648_p11 }
  0x66   : > { %p1305_p7 = scmp.ne.s32.totalorder %s1659_s19, %s1304_s18  ;;  %s1309_s17 = scalar_lea.hbm %s1849_s3, 1536 }
  0x67   : > { %p1310_p2 = scmp.lt.u32.totalorder %s1659_s19, %s1849_s3  ;;  %p1311_p3 = scmp.lt.u32.totalorder %s1309_s17, %s1304_s18 }
  0x68   : > { %p1307_p13 = pnand %p1306_p12, %p1305_p7  ;;  %p1313_p9 = scmp.lt.u32.totalorder %s1304_s18, %s1659_s19 }
  0x69   : > { %p1312_p6 = por %p1311_p3, %p1310_p2 }
  0x6a   : > { %p1308_p0 = pneg %p1307_p13 }
  0x6b   : > { %p1314_p1 = por %p1313_p9, %p1312_p6 }
  0x6d   : > { %p1315_p4 = pnand %p1314_p1, %p1308_p0 }
  0x6f   : > { %1318 = shalt.err (!%p1315_p4)
}
  0x70   : > { %s1319_s20 = scalar_lea.vmem %s1661_s27, 768  ;;  %s1461_s26 = smov [#allocation9]  }
  0x71   : > { %p1320_p5 = scmp.ne.s32.totalorder %s1661_s27, %s1319_s20  ;;  %s1324_s15 = sshll.u32 %s1461_s26, 4  ;;  %s1325_s15 = int_to_ptr.vmem [resolvable:$false] %s1324_s15 }
  0x72   : > { %s1326_s21 = scalar_lea.vmem %s1325_s15, 1536  ;;  %p1327_p7 = scmp.lt.s32.totalorder %s1661_s27, %s1325_s15 }
  0x73   : > { %p1322_p8 = pnand %p1320_p5, %p1306_p12  ;;  %p1328_p13 = scmp.lt.s32.totalorder %s1326_s21, %s1319_s20 }
  0x75   : > { %p1323_p10 = pneg %p1322_p8  ;;  %p1329_p2 = por %p1328_p13, %p1327_p7 }
  0x77   : > { %p1330_p3 = pnand %p1329_p2, %p1323_p10 }
  0x79   : > { %1333 = shalt.err (!%p1330_p3)
}
  0x7a   : > { %s1872_s18 = smov 4   ;;  %s1873_s22 = smov 64  }
  0x7b   : > { %1124 = dma.hbm_to_vmem [thread:$0]  (!%p1648_p11), %s1659_s19, 768, %s1661_s27, %s1663_s16, %s1873_s22, %s1873_s22, %s1872_s18  }
  0x7c   : > { %p1874_p12 = scmp.ne.s32.totalorder %s1867_s14, 0 }
  0x7d   : > { %p1875_p0 = scmp.ne.s32.totalorder (!%p1874_p12), %s1865_s12, 0 }
  0x7e   : > { %345 = sbr.rel (%p1874_p12) target bundleno = 1033 (0x409), region = 48 }
  0x85   : > { %1411 = dma.done.wait (%p1875_p0), [#allocation4], 256  }
  0x86   : > { %1413 = vsyncadd (%p1875_p0), [#allocation4], 4294967040 }
  0x87   : > { %1415 = dma.done.wait (%p1875_p0), [#allocation7], 272  }
  0x88   : > { %1417 = vsyncadd (%p1875_p0), [#allocation7], 4294967024  ;;  %s359_s11 = sand.u32 1, %s1436_s28   ;;  %p1876_p11 = scmp.ne.s32.totalorder %s1866_s13, 0 }
  0x89   : > { %s1088_s25 = smul.u32 48, %s359_s11  ;;  %s360_s27 = scalar_lea.sflag [#allocation10], %s359_s11 }
  0x8b   : > { %s1705_s19 = scalar_lea.vmem [#allocation9], %s1088_s25 }
  0x8c   : > { %1419 = dma.done.wait (%p1876_p11), %s360_s27, 768  }
  0x8d   : > { %1421 = vsyncadd (%p1876_p11), %s360_s27, 4294966528  ;;  %p395_p6 = scmp.lt.s32.totalorder %s1444_s30, 1  ;;  %p995_p9 = scmp.ne.s32.totalorder %s1444_s30, 0 }
  0x8e   : > { %v1202_v0 = vld [vmem:[#allocation6] sm:$0xff] (!%p995_p9)   ;;  %v1462_v1 = vmov (!%p995_p9), 0.0   ;;  %v1203_v2 = vld [vmem:[#allocation6 + $0x8] sm:$0xff] (!%p995_p9)   ;;  %vm1463_vm0 = vmmov (!%p995_p9), 0   ;;  %v405_v3 = vld [vmem:[#allocation3] sm:$0xff] (!%p995_p9)  ;;  %vm431_vm1 = vcmask (!%p995_p9), 261120  }
  0x8f   : > { %s1713_s14 = scalar_select %p395_p6, %s1444_s30, 1 }
  0x90   : > { %404 = sbr.rel (%p995_p9) target bundleno = 369 (0x171), region = 68  ;;  %1046 = vmatprep.subr.bf16.mxu0 (!%p995_p9), %v1462_v1  ;;  %1050 = vmatprep.mubr.msk.bf16.mxu0 (!%p995_p9), %vm1463_vm0, %v1462_v1  ;;  %v406_v4 = vld [vmem:[#allocation3 + $0x8] sm:$0xff] (!%p995_p9)  ;;  %v996_v6 = vld [vmem:[#allocation8] ss:$0 sm:$0xff] (!%p995_p9) }
  0x91   : > { %s397_s17 = scalar_lea.vmem %s1850_s4, %s1713_s14  ;;  %1047 = vmatpush3.bf16.msra.mxu0 (!%p995_p9), %v1202_v0  ;;  %v407_v5 = vpack.c.bf16 (!%p995_p9), %v406_v4, %v405_v3 }
  0x92   : > { %1048 = vmatprep.subr.bf16.mxu0 (!%p995_p9), %v1462_v1 }
  0x95   : > { %1049 = vmatpush3.bf16.msra.mxu0 (!%p995_p9), %v1203_v2 }
  0x98   : > { %1051 = vmatmul.mubr.msk.bf16.vlgmr.msra.gmra.mrb[0].mxu0 %vm431_vm1, %v407_v5 }
 0x16b   : > { %v469_v7 = vpop.f32.mrb[0].mxu0 }
 0x16c   : > { %v470_v8 = vadd.f32 %v996_v6, %v469_v7  ;;  %v1052_v9 = vpop.f32.mrb[1].mxu0 }
 0x16d   : > { %v472_v10 = vpop.f32.mrb[2].mxu0 }
 0x16e   : > { %476 = vst.msk [vmem:[#allocation2] sm:$0xff] %vm431_vm1, %v470_v8  ;;  %v473_v11 = vadd.f32 %v996_v6, %v472_v10  ;;  %v1053_v12 = vpop.f32.mrb[3].mxu0 }
 0x170   : > { %477 = vst.msk [vmem:[#allocation2 + $0x8] sm:$0xff] %vm431_vm1, %v473_v11 }
 0x171 PF: > { %v1204_v13 = vld [vmem:[%s1705_s19 + $0x10] sm:$0xff]   ;;  %v480_v14 = vlaneseq  ;;  %v1464_v15 = vmov 0.0   ;;  %v1205_v16 = vld [vmem:[%s1705_s19] sm:$0xff]   ;;  %v1206_v17 = vld [vmem:[%s1705_s19 + $0x18] sm:$0xff]   ;;  %vm1465_vm2 = vmmov 0   ;;  %vm543_vm3 = vcmask 261120  }
 0x172   : > { %1054 = vmatprep.subr.bf16.mxu0 %v1464_v15  ;;  %1062 = vmatprep.subr.bf16.mxu1 %v1464_v15  ;;  %v1207_v18 = vld [vmem:[%s1705_s19 + $0x8] sm:$0xff]   ;;  %v1208_v23 = vld [vmem:[%s1705_s19 + $0x20] sm:$0xff]   ;;  %s1466_s24 = smov 96   ;;  %p1020_p1 = scmp.ne.s32.totalorder %s1444_s30, 1 }
 0x173   : > { %1055 = vmatpush3.bf16.msra.mxu0 %v1204_v13  ;;  %1058 = vmatprep.mubr.msk.bf16.mxu0 %vm1465_vm2, %v1464_v15  ;;  %v481_v19 = vshrl.u32 %v480_v14, 7  ;;  %v1209_v37 = vld [vmem:[%s1705_s19 + $0x28] sm:$0xff]   ;;  %vm1468_vm10 = vmmov (!%p1020_p1), 0  }
 0x174   : > { %1063 = vmatpush3.bf16.msra.mxu1 %v1205_v16  ;;  %1056 = vmatprep.subr.bf16.mxu0 %v1464_v15  ;;  %v1017_v55 = vld [vmem:[%s397_s17] ss:$0 sm:$0xff]  ;;  %v1467_v16 = vmov (!%p1020_p1), 0.0  }
 0x175   : > { %1064 = vmatprep.subr.bf16.mxu1 %v1464_v15  ;;  %v1725_v20 = vld [vmem:[#allocation2] sm:$0xff]  ;;  %1066 = vmatprep.mubr.msk.bf16.mxu1 %vm1465_vm2, %v1464_v15  ;;  %v482_v24 = vadd.s32 8, %v481_v19  ;;  %v487_v25 = vand.u32 7, %v481_v19  ;;  %vm509_vm4 = vcmp.lt.s32.totalorder %v481_v19, 1  ;;  %vm646_vm7 = vcmp.lt.s32.totalorder %v481_v19, 7 }
 0x176   : > { %v507_v26 = vrot.slane %v1725_v20, 7  ;;  %v644_v31 = vrot.slane %v1725_v20, 1  ;;  %v1021_v19 = vld [vmem:[%s1852_s6] ss:$0 sm:$0xff] (!%p1020_p1) }
 0x177   : > { %v1727_v21 = vld [vmem:[#allocation2 + $0x8] sm:$0xff]  ;;  %1057 = vmatpush3.bf16.msra.mxu0 %v1206_v17  ;;  %v494_v28 = vand.u32 7, %v482_v24  ;;  %vm1735_vm5 = vcmp.ge.s32.totalorder %v487_v25, 1  ;;  %vm1739_vm6 = vcmp.lt.s32.totalorder %v487_v25, 7  ;;  %v833_v25 = vld [vmem:[#allocation3 + $0x8] sm:$0xff] (!%p1020_p1) }
 0x178   : > { %v525_v22 = vpack.c.bf16 %v1727_v21, %v1725_v20  ;;  %v508_v27 = vrot.slane %v1727_v21, 7  ;;  %1065 = vmatpush3.bf16.msra.mxu1 %v1207_v18  ;;  %1070 = vmatprep.subr.bf16.mxu0 %v1464_v15  ;;  %v645_v34 = vrot.slane %v1727_v21, 1  ;;  %v1219_v17 = vld [vmem:[%s1851_s5 + $0x8] sm:$0xff] (!%p1020_p1)  }
 0x179   : > { %vm513_vm8 = vcmp.ge.s32.totalorder %v494_v28, 1  ;;  %vm650_vm9 = vcmp.lt.s32.totalorder %v494_v28, 7 }
 0x17a   : > { %v510_v32 = vsel %vm509_vm4, %v507_v26, %v508_v27  ;;  %v511_v33 = vsel %vm509_vm4, %v508_v27, %v507_v26  ;;  %1059 = vmatmul.mubr.msk.bf16.vlgmr.msra.gmra.mrb[0].mxu0 %vm543_vm3, %v525_v22  ;;  %v647_v38 = vsel %vm646_vm7, %v644_v31, %v645_v34  ;;  %v648_v39 = vsel %vm646_vm7, %v645_v34, %v644_v31 }
 0x17b   : > { %v518_v35 = vsel %vm1735_vm5, %v511_v33, 0.0  ;;  %1071 = vmatpush3.bf16.msra.mxu0 %v1208_v23  ;;  %v519_v36 = vsel %vm513_vm8, %v510_v32, 0.0  ;;  %1074 = vmatprep.mubr.msk.bf16.mxu0 %vm1465_vm2, %v1464_v15  ;;  %v655_v41 = vsel %vm1739_vm6, %v647_v38, 0.0  ;;  %v656_v42 = vsel %vm650_vm9, %v648_v39, 0.0 }
 0x17c   : > { %v520_v40 = vpack.c.bf16 %v519_v36, %v518_v35  ;;  %1072 = vmatprep.subr.bf16.mxu0 %v1464_v15  ;;  %v657_v43 = vpack.c.bf16 %v656_v42, %v655_v41  ;;  %v1218_v15 = vld [vmem:[%s1851_s5] sm:$0xff] (!%p1020_p1)  }
 0x17e   : > { %1067 = vmatmul.mubr.msk.bf16.vlgmr.msra.gmra.mrb[0].mxu1 %vm543_vm3, %v520_v40 }
 0x17f   : > { %1073 = vmatpush3.bf16.msra.mxu0 %v1209_v37 }
 0x180   : > { %1078 = vmatprep.subr.bf16.mxu0 (!%p1020_p1), %v1467_v16 }
 0x182   : > { %1075 = vmatmul.mubr.msk.bf16.vlgmr.msra.gmra.mrb[4].mxu0 %vm543_vm3, %v657_v43 }
 0x183   : > { %1079 = vmatpush3.bf16.msra.mxu0 (!%p1020_p1), %v1218_v15  ;;  %1082 = vmatprep.mubr.msk.bf16.mxu0 (!%p1020_p1), %vm1468_vm10, %v1467_v16 }
 0x184   : > { %1080 = vmatprep.subr.bf16.mxu0 (!%p1020_p1), %v1467_v16 }
 0x187   : > { %1081 = vmatpush3.bf16.msra.mxu0 (!%p1020_p1), %v1219_v17 }
 0x24d   : > { %v581_v44 = vpop.f32.mrb[0].mxu0 }
 0x24e   : > { %v1060_v45 = vpop.f32.mrb[1].mxu0 }
 0x24f   : > { %v584_v46 = vpop.f32.mrb[2].mxu0 }
 0x250   : > { %v1061_v47 = vpop.f32.mrb[3].mxu0 }
 0x251   : > { %v637_v48 = vpop.f32.mrb[0].mxu1 }
 0x252   : > { %v638_v49 = vadd.f32 %v637_v48, %v581_v44  ;;  %v1068_v50 = vpop.f32.mrb[1].mxu1 }
 0x253   : > { %v640_v51 = vpop.f32.mrb[2].mxu1 }
 0x254   : > { %v641_v52 = vadd.f32 %v640_v51, %v584_v46  ;;  %v1069_v53 = vpop.f32.mrb[3].mxu1 }
 0x255   : > { %v712_v54 = vpop.f32.mrb[4].mxu0 }
 0x256   : > { %v719_v56 = vadd.f32 %v712_v54, %v638_v49  ;;  %v1076_v57 = vpop.f32.mrb[5].mxu0 }
 0x257   : > { %v715_v58 = vpop.f32.mrb[6].mxu0 }
 0x258   : > { %v728_v59 = vadd.f32 %v1017_v55, %v719_v56  ;;  %v720_v60 = vadd.f32 %v715_v58, %v641_v52  ;;  %v1077_v61 = vpop.f32.mrb[7].mxu0 }
 0x25a   : > { %v1018_v62 = vmul.f32 -1.442695, %v728_v59  ;;  %v729_v63 = vadd.f32 %v1017_v55, %v720_v60 }
 0x25c   : > { %1210 = vpow2.f32 %v1018_v62  ;;  %v1019_v0 = vmul.f32 -1.442695, %v729_v63 }
 0x25e   : > { %1212 = vpow2.f32 %v1019_v0 }
 0x266   : > { %v1211_v1 = vpop.eup %1210 }
 0x267   : > { %v736_v2 = vadd.f32 1.0, %v1211_v1 }
 0x268   : > { %v1213_v3 = vpop.eup %1212 }
 0x269   : > { %1214 = vrcp.f32 %v736_v2  ;;  %v737_v4 = vadd.f32 1.0, %v1213_v3 }
 0x26b   : > { %1216 = vrcp.f32 %v737_v4 }
 0x273   : > { %v1215_v5 = vpop.eup %1214 }
 0x274   : > { %744 = vrot.lane.b32.xlu0 %v1215_v5, %s1466_s24 }
 0x275   : > { %v1217_v6 = vpop.eup %1216 }
 0x278   : > { %746 = vrot.lane.b32.xlu0 %v1217_v6, %s1466_s24 }
 0x2e6   : > { %v745_v7 = vpop.permute.xlu0 %744 }
 0x2e7   : > { %v750_v8 = vmul.f32 %v745_v7, %v728_v59 }
 0x2e9   : > { %v752_v9 = vadd.f32 %v750_v8, %v1725_v20 }
 0x2ea   : > { %v747_v10 = vpop.permute.xlu0 %746 }
 0x2eb   : > { %v754_v11 = vmul.f32 0.70710677, %v752_v9  ;;  %v751_v12 = vmul.f32 %v747_v10, %v729_v63  ;;  %761 = sbr.rel (%p1020_p1) target bundleno = 976 (0x3d0), region = 72 }
 0x2ed   : > { %756 = vst.msk [vmem:[#allocation2] sm:$0xff] %vm543_vm3, %v754_v11  ;;  %v753_v13 = vadd.f32 %v751_v12, %v1727_v21  ;;  %v832_v21 = vld [vmem:[#allocation3] sm:$0xff] (!%p1020_p1) }
 0x2ef   : > { %v755_v14 = vmul.f32 0.70710677, %v753_v13 }
 0x2f1   : > { %757 = vst.msk [vmem:[#allocation2 + $0x8] sm:$0xff] %vm543_vm3, %v755_v14  ;;  %v762_v18 = vpack.c.bf16 (!%p1020_p1), %v755_v14, %v754_v11 }
 0x2f3   : > { %1083 = vmatmul.mubr.msk.bf16.vlgmr.msra.gmra.mrb[0].mxu0 %vm543_vm3, %v762_v18 }
 0x3c6   : > { %v823_v20 = vpop.f32.mrb[0].mxu0 }
 0x3c7   : > { %v824_v22 = vadd.f32 %v1021_v19, %v823_v20  ;;  %v1084_v23 = vpop.f32.mrb[1].mxu0 }
 0x3c8   : > { %v826_v24 = vpop.f32.mrb[2].mxu0 }
 0x3c9   : > { %830 = vst.msk [vmem:[#allocation11] sm:$0xff] %vm543_vm3, %v824_v22  ;;  %v834_v26 = vadd.f32 %v832_v21, %v824_v22  ;;  %v827_v27 = vadd.f32 %v1021_v19, %v826_v24  ;;  %v1085_v28 = vpop.f32.mrb[3].mxu0 }
 0x3cb   : > { %v836_v29 = vmul.f32 0.70710677, %v834_v26  ;;  %831 = vst.msk [vmem:[#allocation11 + $0x8] sm:$0xff] %vm543_vm3, %v827_v27  ;;  %v835_v30 = vadd.f32 %v833_v25, %v827_v27 }
 0x3cd   : > { %838 = vst.msk [vmem:[#allocation12] sm:$0xff] %vm543_vm3, %v836_v29  ;;  %v837_v31 = vmul.f32 0.70710677, %v835_v30 }
 0x3cf   : > { %839 = vst.msk [vmem:[#allocation12 + $0x8] sm:$0xff] %vm543_vm3, %v837_v31 }
 0x3d0 PF: > { %s1881_s22 = sadd.s32 4294967295, %s1452_s10   ;;  %s1469_s25 = smov [#allocation11]  }
 0x3d1   : > { %p1780_p4 = scmp.eq.s32.totalorder %s1881_s22, 1  ;;  %s849_s27 = sshll.u32 %s1469_s25, 4  ;;  %s850_s27 = int_to_ptr.vmem [resolvable:$true] %s849_s27 }
 0x3d2   : > { %s1334_s19 = scalar_lea.vmem %s850_s27, 256  ;;  %p1341_p7 = scmp.lt.s32.totalorder %s850_s27, %s850_s27 }
 0x3d3   : > { %p1335_p5 = scmp.ne.s32.totalorder %s850_s27, %s1334_s19  ;;  %p1342_p13 = scmp.lt.s32.totalorder %s1334_s19, %s1334_s19 }
 0x3d5   : > { %p1336_p8 = pnand %p1335_p5, %p1780_p4  ;;  %p1343_p2 = por %p1342_p13, %p1341_p7 }
 0x3d7   : > { %p1337_p10 = pneg %p1336_p8 }
 0x3d9   : > { %p1344_p3 = pnand %p1343_p2, %p1337_p10 }
 0x3db   : > { %1347 = shalt.err (!%p1344_p3)
}
 0x3dc   : > { %s1348_s16 = scalar_lea.hbm %s1853_s7, 256 }
 0x3dd   : > { %p1349_p12 = scmp.ne.s32.totalorder %s1853_s7, %s1348_s16  ;;  %p1354_p6 = scmp.lt.u32.totalorder %s1348_s16, %s1853_s7 }
 0x3df   : > { %p1350_p0 = pnand %p1349_p12, %p1780_p4 }
 0x3e1   : > { %p1351_p11 = pneg %p1350_p0 }
 0x3e3   : > { %p1356_p9 = pnand %p1354_p6, %p1351_p11 }
 0x3e5   : > { %1359 = shalt.err (!%p1356_p9)
}
 0x3e6   : > { %s1470_s20 = smov 128   ;;  %s1471_s26 = smov 8  }
 0x3e7   : > { %1104 = dma.vmem_to_hbm [thread:$0]  (%p1780_p4), %s850_s27, 256, %s1853_s7, [#allocation5], %s1470_s20, %s1470_s20, %s1471_s26  }
 0x3e8   : > { %s1472_s30 = smov [#allocation12]  }
 0x3e9   : > { %s865_s18 = sshll.u32 %s1472_s30, 4  ;;  %s866_s18 = int_to_ptr.vmem [resolvable:$true] %s865_s18 }
 0x3ea   : > { %s1360_s22 = scalar_lea.vmem %s866_s18, 256  ;;  %p1367_p10 = scmp.lt.s32.totalorder %s866_s18, %s866_s18 }
 0x3eb   : > { %p1361_p1 = scmp.ne.s32.totalorder %s866_s18, %s1360_s22  ;;  %p1368_p7 = scmp.lt.s32.totalorder %s1360_s22, %s1360_s22 }
 0x3ed   : > { %p1362_p5 = pnand %p1361_p1, %p1780_p4  ;;  %p1369_p13 = por %p1368_p7, %p1367_p10 }
 0x3ef   : > { %p1363_p8 = pneg %p1362_p5 }
 0x3f1   : > { %p1370_p2 = pnand %p1369_p13, %p1363_p8 }
 0x3f3   : > { %1373 = shalt.err (!%p1370_p2)
}
 0x3f4   : > { %s1883_s14 = sld [smem:[#allocation20_spill]] }
 0x3fa   : > { %s1374_s12 = scalar_lea.hbm %s1883_s14, 256 }
 0x3fb   : > { %p1375_p3 = scmp.ne.s32.totalorder %s1883_s14, %s1374_s12  ;;  %p1380_p11 = scmp.lt.u32.totalorder %s1374_s12, %s1883_s14 }
 0x3fd   : > { %p1376_p12 = pnand %p1375_p3, %p1780_p4 }
 0x3ff   : > { %p1377_p0 = pneg %p1376_p12 }
 0x401   : > { %p1382_p6 = pnand %p1380_p11, %p1377_p0 }
 0x403   : > { %1385 = shalt.err (!%p1382_p6)
}
 0x404   : > { %1106 = dma.vmem_to_hbm [thread:$0]  (%p1780_p4), %s866_s18, 256, %s1883_s14, [#allocation13], %s1470_s20, %s1470_s20, %s1471_s26  }
 0x405   : > { %1423 = dma.done.wait (%p1780_p4), [#allocation5], 256  }
 0x406   : > { %1425 = vsyncadd (%p1780_p4), [#allocation5], 4294967040 }
 0x407   : > { %1427 = dma.done.wait (%p1780_p4), [#allocation13], 256  }
 0x408   : > { %1429 = vsyncadd (%p1780_p4), [#allocation13], 4294967040 }
 0x409 PF: > { %s26_s10 = sadd.s32 1, %s1452_s10   ;;  %s1884_s27 = smov %s1436_s28 }
 0x40a   : > { %p23_p9 = scmp.ge.s32.totalorder %s26_s10, 4   ;;  %s1885_s28 = smov %s1440_s29 }
 0x40b   : > { %s1886_s29 = smov %s1653_s23  ;;  %s1887_s30 = smov %s1448_s9 }
 0x40c   : > { %s1888_s9 = smov %s1890_s1  ;;  %25 = sbr.rel (!%p23_p9) target bundleno = 11 (0xb), region = 122 }
 0x413   :  { %885 = vsyncpa [#allocation4], 1 }
 0x414   :  { %887 = vsyncpa [#allocation4 + $0x1], 1 }
 0x415   :  { %888 = vsyncpa [#allocation7], 1 }
 0x416   :  { %889 = vsyncpa [#allocation10], 1 }
 0x417   :  { %891 = vsyncpa [#allocation10 + $0x1], 1 }
 0x418   :  { %892 = vsyncpa [#allocation5], 1 }
 0x419   :  { %894 = vsyncpa [#allocation5 + $0x1], 1 }
 0x41a   :  { %895 = vsyncpa [#allocation13], 1 }

// kernel: tpu_custom_call.1
= control target key start
LH: loop header
LB: loop body
LE: loop exit
PB: predicated region body
PF: predicated region fallthrough
CT: control target
= control target key end

     0   :  { %s1846_s0 = inlined_call_operand.hbm [shape: f32[16,32], index: 0, kind: input, shape index: {}]   ;;  %s1847_s1 = inlined_call_operand.hbm [shape: bf16[32,32], index: 1, kind: input, shape index: {}]   ;;  %s1848_s2 = inlined_call_operand.hbm [shape: f32[1,32], index: 2, kind: input, shape index: {}]   ;;  %s1849_s3 = inlined_call_operand.hbm [shape: bf16[2,3,32,64], index: 3, kind: input, shape index: {}]   ;;  %s1850_s4 = inlined_call_operand.vmem [shape: f32[2,1,64], index: 4, kind: input, shape index: {}]   ;;  %s1851_s5 = inlined_call_operand.vmem [shape: bf16[32,32], index: 5, kind: input, shape index: {}]   ;;  %s1852_s6 = inlined_call_operand.vmem [shape: f32[1,32], index: 6, kind: input, shape index: {}]   ;;  %s1853_s7 = inlined_call_operand.hbm [shape: f32[16,32], index: 7, kind: output, shape index: {0}]   ;;  %s1854_s8 = inlined_call_operand.hbm [shape: f32[16,32], index: 8, kind: output, shape index: {1}]  }
   0x1   :  { %1863 = sst [smem:[#allocation19_spill]] %s1847_s1 }
   0x2   :  { %1864 = sst [smem:[#allocation20_spill]] %s1854_s8 }
   0x3   :  { %14 = vsyncpa [#allocation4], 0 }
   0x4   :  { %15 = vsyncpa [#allocation7], 0 }
   0x5   :  { %16 = vsyncpa [#allocation10], 0 }
   0x6   :  { %18 = vsyncpa [#allocation10 + $0x1], 0 }
   0x7   :  { %19 = vsyncpa [#allocation5], 0 }
   0x8   :  { %20 = vsyncpa [#allocation13], 0  ;;  %s1518_s27 = smov 0   ;;  %s1520_s28 = smov 0  }
   0x9   :  { %s1522_s29 = smov 0   ;;  %s1524_s30 = smov 0  }
   0xa   :  { %s1526_s9 = smov 0   ;;  %s1528_s10 = smov 0  }
   0xb LB: > { %s1859_s11 = sadd.s32 4294967295, %s1452_s10   ;;  %p126_p0 = scmp.ne.s32.totalorder %s1436_s28, %s1432_s27  ;;  %s1452_s10 = sphi %s1528_s10, %s26_s10   ;;  %s1448_s9 = sphi %s1526_s9, %s1888_s9   ;;  %s1444_s30 = sphi %s1524_s30, %s1887_s30   ;;  %s1440_s29 = sphi %s1522_s29, %s1886_s29   ;;  %s1436_s28 = sphi %s1520_s28, %s1885_s28   ;;  %s1432_s27 = sphi %s1518_s27, %s1884_s27  }
   0xc   : > { %p1550_p1 = scmp.eq.s32.totalorder %s1859_s11, 0  ;;  %p985_p2 = scmp.ge.s32.totalorder %s1452_s10, 1 }
   0xd   : > { %p257_p3 = scmp.lt.s32.totalorder %s1452_s10, 3  ;;  %s1454_s15 = smov [#allocation6]  }
   0xe   : > { %s1865_s12 = scalar_select %p1550_p1, 1, 0 }
   0xf   : > { %p1558_p4 = por %p1550_p1, %p126_p0  ;;  %p1562_p5 = pnand %p985_p2, %p257_p3 }
  0x10   : > { %s285_s16 = sshll.u32 %s1454_s15, 4  ;;  %s1455_s18 = smov [#allocation3]   ;;  %s286_s16 = int_to_ptr.vmem [resolvable:$true] %s285_s16 }
  0x11   : > { %s1866_s13 = scalar_select %p1558_p4, 1, 0 }
  0x12   : > { %s1867_s14 = scalar_select %p1562_p5, 1, 0 }
  0x13   : > { %p1111_p6 = pneg %p1562_p5  ;;  %s272_s19 = sshll.u32 %s1455_s18, 4  ;;  %s273_s19 = int_to_ptr.vmem [resolvable:$true] %s272_s19 }
  0x14   : > { %s1869_s1 = sld [smem:[#allocation19_spill]] }
  0x15   : > { %p1570_p7 = pnand %p1111_p6, %p1550_p1 }
  0x17   : > { %p1582_p9 = pneg %p1570_p7 }
  0x1a   : > { %s1220_s22 = scalar_lea.hbm %s1869_s1, 256 }
  0x1b   : > { %p1221_p8 = scmp.ne.s32.totalorder %s1869_s1, %s1220_s22  ;;  %p1227_p12 = scmp.lt.u32.totalorder %s1220_s22, %s1869_s1 }
  0x1d   : > { %p1223_p10 = pnand %p1582_p9, %p1221_p8 }
  0x1f   : > { %p1224_p11 = pneg %p1223_p10 }
  0x21   : > { %p1229_p13 = pnand %p1227_p12, %p1224_p11 }
  0x23   : > { %1232 = shalt.err (!%p1229_p13)
}
  0x24   : > { %s1233_s15 = scalar_lea.vmem %s286_s16, 256  ;;  %p1241_p6 = scmp.lt.s32.totalorder %s286_s16, %s286_s16 }
  0x25   : > { %p1234_p0 = scmp.ne.s32.totalorder %s286_s16, %s1233_s15  ;;  %p1242_p4 = scmp.lt.s32.totalorder %s1233_s15, %s1233_s15 }
  0x27   : > { %p1236_p2 = pnand %p1234_p0, %p1582_p9  ;;  %p1243_p1 = por %p1242_p4, %p1241_p6 }
  0x29   : > { %p1237_p3 = pneg %p1236_p2 }
  0x2b   : > { %p1244_p5 = pnand %p1243_p1, %p1237_p3 }
  0x2d   : > { %1247 = shalt.err (!%p1244_p5)
}
  0x2e   : > { %s1861_s18 = smov 64   ;;  %s1862_s20 = smov 4  }
  0x2f   : > { %1117 = dma.hbm_to_vmem [thread:$0]  (!%p1570_p7), %s1869_s1, 256, %s286_s16, [#allocation7], %s1861_s18, %s1861_s18, %s1862_s20  }
  0x30   : > { %s1248_s26 = scalar_lea.hbm %s1846_s0, 256 }
  0x31   : > { %p1249_p1 = scmp.ne.s32.totalorder %s1846_s0, %s1248_s26  ;;  %p1255_p8 = scmp.lt.u32.totalorder %s1248_s26, %s1846_s0 }
  0x33   : > { %p1251_p4 = pnand %p1249_p1, %p1582_p9 }
  0x35   : > { %p1252_p5 = pneg %p1251_p4 }
  0x37   : > { %p1257_p10 = pnand %p1255_p8, %p1252_p5 }
  0x39   : > { %1260 = shalt.err (!%p1257_p10)
}
  0x3a   : > { %s1261_s21 = scalar_lea.vmem %s273_s19, 256  ;;  %p1269_p0 = scmp.lt.s32.totalorder %s273_s19, %s273_s19 }
  0x3b   : > { %p1262_p11 = scmp.ne.s32.totalorder %s273_s19, %s1261_s21  ;;  %p1270_p2 = scmp.lt.s32.totalorder %s1261_s21, %s1261_s21 }
  0x3d   : > { %p1264_p12 = pnand %p1262_p11, %p1582_p9  ;;  %p1271_p3 = por %p1270_p2, %p1269_p0 }
  0x3f   : > { %p1265_p13 = pneg %p1264_p12 }
  0x41   : > { %p1272_p6 = pnand %p1271_p3, %p1265_p13 }
  0x43   : > { %1275 = shalt.err (!%p1272_p6)
}
  0x44   : > { %s1458_s16 = smov 128   ;;  %s1459_s22 = smov 8  }
  0x45   : > { %1114 = dma.hbm_to_vmem [thread:$0]  (!%p1570_p7), %s1846_s0, 256, %s273_s19, [#allocation4], %s1458_s16, %s1458_s16, %s1459_s22  }
  0x46   : > { %s1460_s23 = smov [#allocation8]   ;;  %s1276_s15 = scalar_lea.hbm %s1848_s2, 16 }
  0x47   : > { %s299_s24 = sshll.u32 %s1460_s23, 4  ;;  %p1277_p1 = scmp.ne.s32.totalorder %s1848_s2, %s1276_s15  ;;  %s300_s24 = int_to_ptr.vmem [resolvable:$true] %s299_s24 }
  0x48   : > { %p1283_p8 = scmp.lt.u32.totalorder %s1276_s15, %s1848_s2 }
  0x49   : > { %p1279_p4 = pnand %p1277_p1, %p1582_p9 }
  0x4b   : > { %p1280_p5 = pneg %p1279_p4 }
  0x4d   : > { %p1285_p10 = pnand %p1283_p8, %p1280_p5 }
  0x4f   : > { %1288 = shalt.err (!%p1285_p10)
}
  0x50   : > { %s1289_s19 = scalar_lea.vmem %s300_s24, 16  ;;  %s1296_s16 = scalar_lea.vmem %s300_s24, 32 }
  0x51   : > { %p1290_p11 = scmp.ne.s32.totalorder %s300_s24, %s1289_s19  ;;  %p1297_p0 = scmp.lt.s32.totalorder %s300_s24, %s300_s24 }
  0x52   : > { %p1298_p2 = scmp.lt.s32.totalorder %s1296_s16, %s1289_s19 }
  0x53   : > { %p1292_p12 = pnand %p1290_p11, %p1582_p9 }
  0x54   : > { %p1299_p3 = por %p1298_p2, %p1297_p0 }
  0x55   : > { %p1293_p13 = pneg %p1292_p12 }
  0x57   : > { %p1300_p6 = pnand %p1299_p3, %p1293_p13 }
  0x59   : > { %1303 = shalt.err (!%p1300_p6)
}
  0x5a   : > { %1120 = dma.hbm_to_vmem [thread:$0]  (!%p1570_p7), %s1848_s2, 16, %s300_s24, [#allocation7]  }
  0x5b   : > { %s35_s1 = sadd.s32 1, %s1448_s9  ;;  %s113_s25 = sadd.s32 1, %s1440_s29 }
  0x5c   : > { %p36_p9 = scmp.ge.s32.totalorder %s35_s1, 2  ;;  %p120_p1 = scmp.ne.s32.totalorder %s1440_s29, %s1436_s28 }
  0x5d   : > { %p121_p4 = scmp.eq.s32.totalorder %s1452_s10, 0  ;;  %p1128_p8 = scmp.lt.s32.totalorder %s1452_s10, 2 }
  0x5e   : > { %s1890_s1 = smov (%p36_p9, %s35_s1), 0  ;;  %s316_s20 = sand.u32 1, %s1440_s29  }
  0x5f   : > { %p122_p5 = por %p121_p4, %p120_p1  ;;  %s110_s17 = ssub.s32 %s1448_s9, %s1890_s1 }
  0x60   : > { %p111_p10 = scmp.eq.s32.totalorder %s110_s17, 0  ;;  %s1086_s8 = smul.u32 48, %s316_s20 }
  0x61   : > { %p1648_p11 = pnand %p1128_p8, %p122_p5  ;;  %s1087_s24 = smul.u32 768, %s1448_s9 }
  0x62   : > { %s1653_s23 = scalar_select %p111_p10, %s1440_s29, %s113_s25  }
  0x63   : > { %s320_s26 = scalar_lea.vmem [#allocation9], %s1086_s8  ;;  %s1659_s19 = scalar_lea.hbm %s1849_s3, %s1087_s24 }
  0x64   : > { %s327_s27 = sshll.u32 %s320_s26, 4  ;;  %s1663_s16 = scalar_lea.sflag [#allocation10], %s316_s20  ;;  %s1661_s27 = int_to_ptr.vmem [resolvable:$true] %s327_s27 }
  0x65   : > { %s1304_s18 = scalar_lea.hbm %s1659_s19, 768  ;;  %p1306_p12 = pneg %p1648_p11 }
  0x66   : > { %p1305_p7 = scmp.ne.s32.totalorder %s1659_s19, %s1304_s18  ;;  %s1309_s17 = scalar_lea.hbm %s1849_s3, 1536 }
  0x67   : > { %p1310_p2 = scmp.lt.u32.totalorder %s1659_s19, %s1849_s3  ;;  %p1311_p3 = scmp.lt.u32.totalorder %s1309_s17, %s1304_s18 }
  0x68   : > { %p1307_p13 = pnand %p1306_p12, %p1305_p7  ;;  %p1313_p9 = scmp.lt.u32.totalorder %s1304_s18, %s1659_s19 }
  0x69   : > { %p1312_p6 = por %p1311_p3, %p1310_p2 }
  0x6a   : > { %p1308_p0 = pneg %p1307_p13 }
  0x6b   : > { %p1314_p1 = por %p1313_p9, %p1312_p6 }
  0x6d   : > { %p1315_p4 = pnand %p1314_p1, %p1308_p0 }
  0x6f   : > { %1318 = shalt.err (!%p1315_p4)
}
  0x70   : > { %s1319_s20 = scalar_lea.vmem %s1661_s27, 768  ;;  %s1461_s26 = smov [#allocation9]  }
  0x71   : > { %p1320_p5 = scmp.ne.s32.totalorder %s1661_s27, %s1319_s20  ;;  %s1324_s15 = sshll.u32 %s1461_s26, 4  ;;  %s1325_s15 = int_to_ptr.vmem [resolvable:$false] %s1324_s15 }
  0x72   : > { %s1326_s21 = scalar_lea.vmem %s1325_s15, 1536  ;;  %p1327_p7 = scmp.lt.s32.totalorder %s1661_s27, %s1325_s15 }
  0x73   : > { %p1322_p8 = pnand %p1320_p5, %p1306_p12  ;;  %p1328_p13 = scmp.lt.s32.totalorder %s1326_s21, %s1319_s20 }
  0x75   : > { %p1323_p10 = pneg %p1322_p8  ;;  %p1329_p2 = por %p1328_p13, %p1327_p7 }
  0x77   : > { %p1330_p3 = pnand %p1329_p2, %p1323_p10 }
  0x79   : > { %1333 = shalt.err (!%p1330_p3)
}
  0x7a   : > { %s1872_s18 = smov 4   ;;  %s1873_s22 = smov 64  }
  0x7b   : > { %1124 = dma.hbm_to_vmem [thread:$0]  (!%p1648_p11), %s1659_s19, 768, %s1661_s27, %s1663_s16, %s1873_s22, %s1873_s22, %s1872_s18  }
  0x7c   : > { %p1874_p12 = scmp.ne.s32.totalorder %s1867_s14, 0 }
  0x7d   : > { %p1875_p0 = scmp.ne.s32.totalorder (!%p1874_p12), %s1865_s12, 0 }
  0x7e   : > { %345 = sbr.rel (%p1874_p12) target bundleno = 1033 (0x409), region = 48 }
  0x85   : > { %1411 = dma.done.wait (%p1875_p0), [#allocation4], 256  }
  0x86   : > { %1413 = vsyncadd (%p1875_p0), [#allocation4], 4294967040 }
  0x87   : > { %1415 = dma.done.wait (%p1875_p0), [#allocation7], 272  }
  0x88   : > { %1417 = vsyncadd (%p1875_p0), [#allocation7], 4294967024  ;;  %s359_s11 = sand.u32 1, %s1436_s28   ;;  %p1876_p11 = scmp.ne.s32.totalorder %s1866_s13, 0 }
  0x89   : > { %s1088_s25 = smul.u32 48, %s359_s11  ;;  %s360_s27 = scalar_lea.sflag [#allocation10], %s359_s11 }
  0x8b   : > { %s1705_s19 = scalar_lea.vmem [#allocation9], %s1088_s25 }
  0x8c   : > { %1419 = dma.done.wait (%p1876_p11), %s360_s27, 768  }
  0x8d   : > { %1421 = vsyncadd (%p1876_p11), %s360_s27, 4294966528  ;;  %p395_p6 = scmp.lt.s32.totalorder %s1444_s30, 1  ;;  %p995_p9 = scmp.ne.s32.totalorder %s1444_s30, 0 }
  0x8e   : > { %v1202_v0 = vld [vmem:[#allocation6] sm:$0xff] (!%p995_p9)   ;;  %v1462_v1 = vmov (!%p995_p9), 0.0   ;;  %v1203_v2 = vld [vmem:[#allocation6 + $0x8] sm:$0xff] (!%p995_p9)   ;;  %vm1463_vm0 = vmmov (!%p995_p9), 0   ;;  %v405_v3 = vld [vmem:[#allocation3] sm:$0xff] (!%p995_p9)  ;;  %vm431_vm1 = vcmask (!%p995_p9), 261120  }
  0x8f   : > { %s1713_s14 = scalar_select %p395_p6, %s1444_s30, 1 }
  0x90   : > { %404 = sbr.rel (%p995_p9) target bundleno = 369 (0x171), region = 68  ;;  %1046 = vmatprep.subr.bf16.mxu0 (!%p995_p9), %v1462_v1  ;;  %1050 = vmatprep.mubr.msk.bf16.mxu0 (!%p995_p9), %vm1463_vm0, %v1462_v1  ;;  %v406_v4 = vld [vmem:[#allocation3 + $0x8] sm:$0xff] (!%p995_p9)  ;;  %v996_v6 = vld [vmem:[#allocation8] ss:$0 sm:$0xff] (!%p995_p9) }
  0x91   : > { %s397_s17 = scalar_lea.vmem %s1850_s4, %s1713_s14  ;;  %1047 = vmatpush3.bf16.msra.mxu0 (!%p995_p9), %v1202_v0  ;;  %v407_v5 = vpack.c.bf16 (!%p995_p9), %v406_v4, %v405_v3 }
  0x92   : > { %1048 = vmatprep.subr.bf16.mxu0 (!%p995_p9), %v1462_v1 }
  0x95   : > { %1049 = vmatpush3.bf16.msra.mxu0 (!%p995_p9), %v1203_v2 }
  0x98   : > { %1051 = vmatmul.mubr.msk.bf16.vlgmr.msra.gmra.mrb[0].mxu0 %vm431_vm1, %v407_v5 }
 0x16b   : > { %v469_v7 = vpop.f32.mrb[0].mxu0 }
 0x16c   : > { %v470_v8 = vadd.f32 %v996_v6, %v469_v7  ;;  %v1052_v9 = vpop.f32.mrb[1].mxu0 }
 0x16d   : > { %v472_v10 = vpop.f32.mrb[2].mxu0 }
 0x16e   : > { %476 = vst.msk [vmem:[#allocation2] sm:$0xff] %vm431_vm1, %v470_v8  ;;  %v473_v11 = vadd.f32 %v996_v6, %v472_v10  ;;  %v1053_v12 = vpop.f32.mrb[3].mxu0 }
 0x170   : > { %477 = vst.msk [vmem:[#allocation2 + $0x8] sm:$0xff] %vm431_vm1, %v473_v11 }
 0x171 PF: > { %v1204_v13 = vld [vmem:[%s1705_s19 + $0x10] sm:$0xff]   ;;  %v480_v14 = vlaneseq  ;;  %v1464_v15 = vmov 0.0   ;;  %v1205_v16 = vld [vmem:[%s1705_s19] sm:$0xff]   ;;  %v1206_v17 = vld [vmem:[%s1705_s19 + $0x18] sm:$0xff]   ;;  %vm1465_vm2 = vmmov 0   ;;  %vm543_vm3 = vcmask 261120  }
 0x172   : > { %1054 = vmatprep.subr.bf16.mxu0 %v1464_v15  ;;  %1062 = vmatprep.subr.bf16.mxu1 %v1464_v15  ;;  %v1207_v18 = vld [vmem:[%s1705_s19 + $0x8] sm:$0xff]   ;;  %v1208_v23 = vld [vmem:[%s1705_s19 + $0x20] sm:$0xff]   ;;  %s1466_s24 = smov 96   ;;  %p1020_p1 = scmp.ne.s32.totalorder %s1444_s30, 1 }
 0x173   : > { %1055 = vmatpush3.bf16.msra.mxu0 %v1204_v13  ;;  %1058 = vmatprep.mubr.msk.bf16.mxu0 %vm1465_vm2, %v1464_v15  ;;  %v481_v19 = vshrl.u32 %v480_v14, 7  ;;  %v1209_v37 = vld [vmem:[%s1705_s19 + $0x28] sm:$0xff]   ;;  %vm1468_vm10 = vmmov (!%p1020_p1), 0  }
 0x174   : > { %1063 = vmatpush3.bf16.msra.mxu1 %v1205_v16  ;;  %1056 = vmatprep.subr.bf16.mxu0 %v1464_v15  ;;  %v1017_v55 = vld [vmem:[%s397_s17] ss:$0 sm:$0xff]  ;;  %v1467_v16 = vmov (!%p1020_p1), 0.0  }
 0x175   : > { %1064 = vmatprep.subr.bf16.mxu1 %v1464_v15  ;;  %v1725_v20 = vld [vmem:[#allocation2] sm:$0xff]  ;;  %1066 = vmatprep.mubr.msk.bf16.mxu1 %vm1465_vm2, %v1464_v15  ;;  %v482_v24 = vadd.s32 8, %v481_v19  ;;  %v487_v25 = vand.u32 7, %v481_v19  ;;  %vm509_vm4 = vcmp.lt.s32.totalorder %v481_v19, 1  ;;  %vm646_vm7 = vcmp.lt.s32.totalorder %v481_v19, 7 }
 0x176   : > { %v507_v26 = vrot.slane %v1725_v20, 7  ;;  %v644_v31 = vrot.slane %v1725_v20, 1  ;;  %v1021_v19 = vld [vmem:[%s1852_s6] ss:$0 sm:$0xff] (!%p1020_p1) }
 0x177   : > { %v1727_v21 = vld [vmem:[#allocation2 + $0x8] sm:$0xff]  ;;  %1057 = vmatpush3.bf16.msra.mxu0 %v1206_v17  ;;  %v494_v28 = vand.u32 7, %v482_v24  ;;  %vm1735_vm5 = vcmp.ge.s32.totalorder %v487_v25, 1  ;;  %vm1739_vm6 = vcmp.lt.s32.totalorder %v487_v25, 7  ;;  %v833_v25 = vld [vmem:[#allocation3 + $0x8] sm:$0xff] (!%p1020_p1) }
 0x178   : > { %v525_v22 = vpack.c.bf16 %v1727_v21, %v1725_v20  ;;  %v508_v27 = vrot.slane %v1727_v21, 7  ;;  %1065 = vmatpush3.bf16.msra.mxu1 %v1207_v18  ;;  %1070 = vmatprep.subr.bf16.mxu0 %v1464_v15  ;;  %v645_v34 = vrot.slane %v1727_v21, 1  ;;  %v1219_v17 = vld [vmem:[%s1851_s5 + $0x8] sm:$0xff] (!%p1020_p1)  }
 0x179   : > { %vm513_vm8 = vcmp.ge.s32.totalorder %v494_v28, 1  ;;  %vm650_vm9 = vcmp.lt.s32.totalorder %v494_v28, 7 }
 0x17a   : > { %v510_v32 = vsel %vm509_vm4, %v507_v26, %v508_v27  ;;  %v511_v33 = vsel %vm509_vm4, %v508_v27, %v507_v26  ;;  %1059 = vmatmul.mubr.msk.bf16.vlgmr.msra.gmra.mrb[0].mxu0 %vm543_vm3, %v525_v22  ;;  %v647_v38 = vsel %vm646_vm7, %v644_v31, %v645_v34  ;;  %v648_v39 = vsel %vm646_vm7, %v645_v34, %v644_v31 }
 0x17b   : > { %v518_v35 = vsel %vm1735_vm5, %v511_v33, 0.0  ;;  %1071 = vmatpush3.bf16.msra.mxu0 %v1208_v23  ;;  %v519_v36 = vsel %vm513_vm8, %v510_v32, 0.0  ;;  %1074 = vmatprep.mubr.msk.bf16.mxu0 %vm1465_vm2, %v1464_v15  ;;  %v655_v41 = vsel %vm1739_vm6, %v647_v38, 0.0  ;;  %v656_v42 = vsel %vm650_vm9, %v648_v39, 0.0 }
 0x17c   : > { %v520_v40 = vpack.c.bf16 %v519_v36, %v518_v35  ;;  %1072 = vmatprep.subr.bf16.mxu0 %v1464_v15  ;;  %v657_v43 = vpack.c.bf16 %v656_v42, %v655_v41  ;;  %v1218_v15 = vld [vmem:[%s1851_s5] sm:$0xff] (!%p1020_p1)  }
 0x17e   : > { %1067 = vmatmul.mubr.msk.bf16.vlgmr.msra.gmra.mrb[0].mxu1 %vm543_vm3, %v520_v40 }
 0x17f   : > { %1073 = vmatpush3.bf16.msra.mxu0 %v1209_v37 }
 0x180   : > { %1078 = vmatprep.subr.bf16.mxu0 (!%p1020_p1), %v1467_v16 }
 0x182   : > { %1075 = vmatmul.mubr.msk.bf16.vlgmr.msra.gmra.mrb[4].mxu0 %vm543_vm3, %v657_v43 }
 0x183   : > { %1079 = vmatpush3.bf16.msra.mxu0 (!%p1020_p1), %v1218_v15  ;;  %1082 = vmatprep.mubr.msk.bf16.mxu0 (!%p1020_p1), %vm1468_vm10, %v1467_v16 }
 0x184   : > { %1080 = vmatprep.subr.bf16.mxu0 (!%p1020_p1), %v1467_v16 }
 0x187   : > { %1081 = vmatpush3.bf16.msra.mxu0 (!%p1020_p1), %v1219_v17 }
 0x24d   : > { %v581_v44 = vpop.f32.mrb[0].mxu0 }
 0x24e   : > { %v1060_v45 = vpop.f32.mrb[1].mxu0 }
 0x24f   : > { %v584_v46 = vpop.f32.mrb[2].mxu0 }
 0x250   : > { %v1061_v47 = vpop.f32.mrb[3].mxu0 }
 0x251   : > { %v637_v48 = vpop.f32.mrb[0].mxu1 }
 0x252   : > { %v638_v49 = vadd.f32 %v637_v48, %v581_v44  ;;  %v1068_v50 = vpop.f32.mrb[1].mxu1 }
 0x253   : > { %v640_v51 = vpop.f32.mrb[2].mxu1 }
 0x254   : > { %v641_v52 = vadd.f32 %v640_v51, %v584_v46  ;;  %v1069_v53 = vpop.f32.mrb[3].mxu1 }
 0x255   : > { %v712_v54 = vpop.f32.mrb[4].mxu0 }
 0x256   : > { %v719_v56 = vadd.f32 %v712_v54, %v638_v49  ;;  %v1076_v57 = vpop.f32.mrb[5].mxu0 }
 0x257   : > { %v715_v58 = vpop.f32.mrb[6].mxu0 }
 0x258   : > { %v728_v59 = vadd.f32 %v1017_v55, %v719_v56  ;;  %v720_v60 = vadd.f32 %v715_v58, %v641_v52  ;;  %v1077_v61 = vpop.f32.mrb[7].mxu0 }
 0x25a   : > { %v1018_v62 = vmul.f32 -1.442695, %v728_v59  ;;  %v729_v63 = vadd.f32 %v1017_v55, %v720_v60 }
 0x25c   : > { %1210 = vpow2.f32 %v1018_v62  ;;  %v1019_v0 = vmul.f32 -1.442695, %v729_v63 }
 0x25e   : > { %1212 = vpow2.f32 %v1019_v0 }
 0x266   : > { %v1211_v1 = vpop.eup %1210 }
 0x267   : > { %v736_v2 = vadd.f32 1.0, %v1211_v1 }
 0x268   : > { %v1213_v3 = vpop.eup %1212 }
 0x269   : > { %1214 = vrcp.f32 %v736_v2  ;;  %v737_v4 = vadd.f32 1.0, %v1213_v3 }
 0x26b   : > { %1216 = vrcp.f32 %v737_v4 }
 0x273   : > { %v1215_v5 = vpop.eup %1214 }
 0x274   : > { %744 = vrot.lane.b32.xlu0 %v1215_v5, %s1466_s24 }
 0x275   : > { %v1217_v6 = vpop.eup %1216 }
 0x278   : > { %746 = vrot.lane.b32.xlu0 %v1217_v6, %s1466_s24 }
 0x2e6   : > { %v745_v7 = vpop.permute.xlu0 %744 }
 0x2e7   : > { %v750_v8 = vmul.f32 %v745_v7, %v728_v59 }
 0x2e9   : > { %v752_v9 = vadd.f32 %v750_v8, %v1725_v20 }
 0x2ea   : > { %v747_v10 = vpop.permute.xlu0 %746 }
 0x2eb   : > { %v754_v11 = vmul.f32 0.70710677, %v752_v9  ;;  %v751_v12 = vmul.f32 %v747_v10, %v729_v63  ;;  %761 = sbr.rel (%p1020_p1) target bundleno = 976 (0x3d0), region = 72 }
 0x2ed   : > { %756 = vst.msk [vmem:[#allocation2] sm:$0xff] %vm543_vm3, %v754_v11  ;;  %v753_v13 = vadd.f32 %v751_v12, %v1727_v21  ;;  %v832_v21 = vld [vmem:[#allocation3] sm:$0xff] (!%p1020_p1) }
 0x2ef   : > { %v755_v14 = vmul.f32 0.70710677, %v753_v13 }
 0x2f1   : > { %757 = vst.msk [vmem:[#allocation2 + $0x8] sm:$0xff] %vm543_vm3, %v755_v14  ;;  %v762_v18 = vpack.c.bf16 (!%p1020_p1), %v755_v14, %v754_v11 }
 0x2f3   : > { %1083 = vmatmul.mubr.msk.bf16.vlgmr.msra.gmra.mrb[0].mxu0 %vm543_vm3, %v762_v18 }
 0x3c6   : > { %v823_v20 = vpop.f32.mrb[0].mxu0 }
 0x3c7   : > { %v824_v22 = vadd.f32 %v1021_v19, %v823_v20  ;;  %v1084_v23 = vpop.f32.mrb[1].mxu0 }
 0x3c8   : > { %v826_v24 = vpop.f32.mrb[2].mxu0 }
 0x3c9   : > { %830 = vst.msk [vmem:[#allocation11] sm:$0xff] %vm543_vm3, %v824_v22  ;;  %v834_v26 = vadd.f32 %v832_v21, %v824_v22  ;;  %v827_v27 = vadd.f32 %v1021_v19, %v826_v24  ;;  %v1085_v28 = vpop.f32.mrb[3].mxu0 }
 0x3cb   : > { %v836_v29 = vmul.f32 0.70710677, %v834_v26  ;;  %831 = vst.msk [vmem:[#allocation11 + $0x8] sm:$0xff] %vm543_vm3, %v827_v27  ;;  %v835_v30 = vadd.f32 %v833_v25, %v827_v27 }
 0x3cd   : > { %838 = vst.msk [vmem:[#allocation12] sm:$0xff] %vm543_vm3, %v836_v29  ;;  %v837_v31 = vmul.f32 0.70710677, %v835_v30 }
 0x3cf   : > { %839 = vst.msk [vmem:[#allocation12 + $0x8] sm:$0xff] %vm543_vm3, %v837_v31 }
 0x3d0 PF: > { %s1881_s22 = sadd.s32 4294967295, %s1452_s10   ;;  %s1469_s25 = smov [#allocation11]  }
 0x3d1   : > { %p1780_p4 = scmp.eq.s32.totalorder %s1881_s22, 1  ;;  %s849_s27 = sshll.u32 %s1469_s25, 4  ;;  %s850_s27 = int_to_ptr.vmem [resolvable:$true] %s849_s27 }
 0x3d2   : > { %s1334_s19 = scalar_lea.vmem %s850_s27, 256  ;;  %p1341_p7 = scmp.lt.s32.totalorder %s850_s27, %s850_s27 }
 0x3d3   : > { %p1335_p5 = scmp.ne.s32.totalorder %s850_s27, %s1334_s19  ;;  %p1342_p13 = scmp.lt.s32.totalorder %s1334_s19, %s1334_s19 }
 0x3d5   : > { %p1336_p8 = pnand %p1335_p5, %p1780_p4  ;;  %p1343_p2 = por %p1342_p13, %p1341_p7 }
 0x3d7   : > { %p1337_p10 = pneg %p1336_p8 }
 0x3d9   : > { %p1344_p3 = pnand %p1343_p2, %p1337_p10 }
 0x3db   : > { %1347 = shalt.err (!%p1344_p3)
}
 0x3dc   : > { %s1348_s16 = scalar_lea.hbm %s1853_s7, 256 }
 0x3dd   : > { %p1349_p12 = scmp.ne.s32.totalorder %s1853_s7, %s1348_s16  ;;  %p1354_p6 = scmp.lt.u32.totalorder %s1348_s16, %s1853_s7 }
 0x3df   : > { %p1350_p0 = pnand %p1349_p12, %p1780_p4 }
 0x3e1   : > { %p1351_p11 = pneg %p1350_p0 }
 0x3e3   : > { %p1356_p9 = pnand %p1354_p6, %p1351_p11 }
 0x3e5   : > { %1359 = shalt.err (!%p1356_p9)
}
 0x3e6   : > { %s1470_s20 = smov 128   ;;  %s1471_s26 = smov 8  }
 0x3e7   : > { %1104 = dma.vmem_to_hbm [thread:$0]  (%p1780_p4), %s850_s27, 256, %s1853_s7, [#allocation5], %s1470_s20, %s1470_s20, %s1471_s26  }
 0x3e8   : > { %s1472_s30 = smov [#allocation12]  }
 0x3e9   : > { %s865_s18 = sshll.u32 %s1472_s30, 4  ;;  %s866_s18 = int_to_ptr.vmem [resolvable:$true] %s865_s18 }
 0x3ea   : > { %s1360_s22 = scalar_lea.vmem %s866_s18, 256  ;;  %p1367_p10 = scmp.lt.s32.totalorder %s866_s18, %s866_s18 }
 0x3eb   : > { %p1361_p1 = scmp.ne.s32.totalorder %s866_s18, %s1360_s22  ;;  %p1368_p7 = scmp.lt.s32.totalorder %s1360_s22, %s1360_s22 }
 0x3ed   : > { %p1362_p5 = pnand %p1361_p1, %p1780_p4  ;;  %p1369_p13 = por %p1368_p7, %p1367_p10 }
 0x3ef   : > { %p1363_p8 = pneg %p1362_p5 }
 0x3f1   : > { %p1370_p2 = pnand %p1369_p13, %p1363_p8 }
 0x3f3   : > { %1373 = shalt.err (!%p1370_p2)
}
 0x3f4   : > { %s1883_s14 = sld [smem:[#allocation20_spill]] }
 0x3fa   : > { %s1374_s12 = scalar_lea.hbm %s1883_s14, 256 }
 0x3fb   : > { %p1375_p3 = scmp.ne.s32.totalorder %s1883_s14, %s1374_s12  ;;  %p1380_p11 = scmp.lt.u32.totalorder %s1374_s12, %s1883_s14 }
 0x3fd   : > { %p1376_p12 = pnand %p1375_p3, %p1780_p4 }
 0x3ff   : > { %p1377_p0 = pneg %p1376_p12 }
 0x401   : > { %p1382_p6 = pnand %p1380_p11, %p1377_p0 }
 0x403   : > { %1385 = shalt.err (!%p1382_p6)
}
 0x404   : > { %1106 = dma.vmem_to_hbm [thread:$0]  (%p1780_p4), %s866_s18, 256, %s1883_s14, [#allocation13], %s1470_s20, %s1470_s20, %s1471_s26  }
 0x405   : > { %1423 = dma.done.wait (%p1780_p4), [#allocation5], 256  }
 0x406   : > { %1425 = vsyncadd (%p1780_p4), [#allocation5], 4294967040 }
 0x407   : > { %1427 = dma.done.wait (%p1780_p4), [#allocation13], 256  }
 0x408   : > { %1429 = vsyncadd (%p1780_p4), [#allocation13], 4294967040 }
 0x409 PF: > { %s26_s10 = sadd.s32 1, %s1452_s10   ;;  %s1884_s27 = smov %s1436_s28 }
 0x40a   : > { %p23_p9 = scmp.ge.s32.totalorder %s26_s10, 4   ;;  %s1885_s28 = smov %s1440_s29 }
 0x40b   : > { %s1886_s29 = smov %s1653_s23  ;;  %s1887_s30 = smov %s1448_s9 }
 0x40c   : > { %s1888_s9 = smov %s1890_s1  ;;  %25 = sbr.rel (!%p23_p9) target bundleno = 11 (0xb), region = 122 }
 0x413   :  { %885 = vsyncpa [#allocation4], 1 }
 0x414   :  { %887 = vsyncpa [#allocation4 + $0x1], 1 }
 0x415   :  { %888 = vsyncpa [#allocation7], 1 }
 0x416   :  { %889 = vsyncpa [#allocation10], 1 }
 0x417   :  { %891 = vsyncpa [#allocation10 + $0x1], 1 }
 0x418   :  { %892 = vsyncpa [#allocation5], 1 }
 0x419   :  { %894 = vsyncpa [#allocation5 + $0x1], 1 }
 0x41a   :  { %895 = vsyncpa [#allocation13], 1 }

</bundles_post_ra>
